<compile_context>
chip_gen: v7x
topology: tpu7x:2x2x1
jax: 0.10.0
libtpu: 0.0.40
codegen_flags: <defaults>
</compile_context>

<pallas_src>
import functools
import math

import jax
import jax.numpy as jnp
from jax import lax
from jax.experimental import pallas as pl
from jax.experimental.pallas import tpu as pltpu

WORD_VOCAB, WORD_DIM = 11000, 50
UB_VOCAB, UB_DIM = 5, 10
CUR_VOCAB, CUR_DIM = 3, 10
INPUT_DIM = WORD_DIM + UB_DIM + CUR_DIM   # 70
HIDDEN = 128
GATES = 3 * HIDDEN                         # 384
NUM_CLASSES = 3
TIME_CHUNK = 256                           # upper bound on timesteps per grid step
Z_PAD = 1e4                                # sigmoid(Z_PAD + anything finite) == 1.0


def _gru_kernel(gx_ref, whh_ref, bhhn_ref, hid_ref, *, tc, unroll):
    """One grid step = one (batch tile, time chunk) of the GRU recurrence.

    gx_ref:   (tc, Bt, 384) bf16  precomputed x@W_ih + b_ih (+ b_hh for r/z gates)
    whh_ref:  (128, 384)    bf16  W_hh^T
    bhhn_ref: (1, 128)      f32   b_hh for the n gate (applied before the r multiply)
    hid_ref:  (Bt, 128)     f32   hidden state — VMEM-resident across the time axis
    """
    c = pl.program_id(1)                    # time-chunk index (sequential axis)

    @pl.when(c == 0)
    def _():
        hid_ref[...] = jnp.zeros_like(hid_ref)

    # Hoisted out of the loop: JAX does not CSE broadcast_in_dim per iteration.
    bhh_n = jnp.broadcast_to(bhhn_ref[...], hid_ref.shape)        # (Bt, 128) f32

    def step(i, h):
        gx = gx_ref[i].astype(jnp.float32)                        # (Bt, 384)
        # bf16 x bf16 -> f32 accumulate on the MXU; RHS streamed from VMEM ref.
        gh = jnp.dot(h.astype(jnp.bfloat16), whh_ref[...],
                     preferred_element_type=jnp.float32)          # (Bt, 384)
        r = jax.nn.sigmoid(gx[:, :HIDDEN] + gh[:, :HIDDEN])
        z = jax.nn.sigmoid(gx[:, HIDDEN:2 * HIDDEN] + gh[:, HIDDEN:2 * HIDDEN])
        n = jnp.tanh(gx[:, 2 * HIDDEN:] + r * (gh[:, 2 * HIDDEN:] + bhh_n))
        return (1.0 - z) * n + z * h

    # TODO(synk): hold W_hh^T in MXU staging registers for the whole chunk via
    # pltpu.matmul_push_rhs / matmul_acc_lhs / matmul_pop (push once, pop per step)
    # to drop the per-step weight push entirely.
    hid_ref[...] = lax.fori_loop(0, tc, step, hid_ref[...], unroll=unroll)


def _vmem_capacity_bytes():
    try:
        info = pltpu.get_tpu_info()
        cap = getattr(info, "vmem_capacity_bytes", None)
        if cap:
            return int(cap)
    except Exception:
        pass
    return 64 * 1024 * 1024        # conservative default (v7x physical VMEM per TC)


def gru_pallas(gx, w_hh_bf16, b_hh_n):
    """gx: (T, B, 384) bf16 precomputed gate inputs.  Returns (B, 128) f32."""
    T, B, G = gx.shape
    assert G == GATES and T >= 1

    # ---- batch padding + batch tiling (feeds v7x's second TensorCore) ----
    B_pad = -(-B // 8) * 8
    if B_pad != B:
        gx = jnp.pad(gx, ((0, 0), (0, B_pad - B), (0, 0)))
    b_tile = B_pad // 2 if (B_pad >= 16 and B_pad % 16 == 0) else B_pad
    num_btiles = B_pad // b_tile

    # ---- VMEM/batch-aware time chunk (the gx chunk is double-buffered) ----
    vmem_cap = _vmem_capacity_bytes()
    vmem_limit = (vmem_cap * 3) // 4
    gx_budget = vmem_limit // 2                                   # headroom for weights/out
    bytes_per_step = b_tile * GATES * gx.dtype.itemsize * 2       # x2 double buffer
    tc = int(max(1, min(T, TIME_CHUNK, gx_budget // bytes_per_step)))
    num_chunks = -(-T // tc)
    t_pad = num_chunks * tc
    if t_pad != T:
        # Zero-pad the tail, then force the padded steps' z gate to +large so that
        # sigmoid(z) == 1 and h is carried through unchanged (exact no-op steps).
        gx = jnp.pad(gx, ((0, t_pad - T), (0, 0), (0, 0)))
        gx = gx.at[T:, :, HIDDEN:2 * HIDDEN].set(jnp.asarray(Z_PAD, gx.dtype))
    unroll = int(min(8, tc))

    kernel = functools.partial(_gru_kernel, tc=tc, unroll=unroll)
    grid_spec = pltpu.PrefetchScalarGridSpec(
        num_scalar_prefetch=0,
        grid=(num_btiles, num_chunks),
        in_specs=[
            pl.BlockSpec((tc, b_tile, GATES), lambda b, c: (c, b, 0)),  # gx chunk
            pl.BlockSpec((HIDDEN, GATES), lambda b, c: (0, 0)),         # W_hh^T (bf16)
            pl.BlockSpec((1, HIDDEN), lambda b, c: (0, 0)),             # b_hh (n gate)
        ],
        out_specs=pl.BlockSpec((b_tile, HIDDEN), lambda b, c: (b, 0)),  # resident h
    )

    hidden = pl.pallas_call(
        kernel,
        grid_spec=grid_spec,
        out_shape=jax.ShapeDtypeStruct((B_pad, HIDDEN), jnp.float32),
        compiler_params=pltpu.CompilerParams(
            dimension_semantics=("parallel", "arbitrary"),   # batch parallel, time serial
            vmem_limit_bytes=int(vmem_limit)),
    )(gx, w_hh_bf16, b_hh_n)
    return hidden[:B]


def init_params(key):
    ks = jax.random.split(key, 8)
    bound = 1.0 / math.sqrt(HIDDEN)

    # Embedding tables (padding_idx=0 rows zeroed, like nn.Embedding).
    word_tab = jax.random.normal(ks[0], (WORD_VOCAB, WORD_DIM), jnp.float32).at[0].set(0.0)
    ub_tab = jax.random.normal(ks[1], (UB_VOCAB, UB_DIM), jnp.float32).at[0].set(0.0)
    cur_tab = jax.random.normal(ks[2], (CUR_VOCAB, CUR_DIM), jnp.float32).at[0].set(0.0)

    # GRU params (PyTorch layout: weight_ih (3H, 70), weight_hh (3H, 128); stored transposed).
    w_ih_t = jax.random.uniform(ks[3], (INPUT_DIM, GATES), jnp.float32, -bound, bound)
    w_hh_t = jax.random.uniform(ks[4], (HIDDEN, GATES), jnp.float32, -bound, bound)
    b_ih = jax.random.uniform(ks[5], (GATES,), jnp.float32, -bound, bound)
    b_hh = jax.random.uniform(ks[6], (GATES,), jnp.float32, -bound, bound)

    # Linear(128 -> 3), stored transposed.
    w_lin_t = jax.random.uniform(ks[7], (HIDDEN, NUM_CLASSES), jnp.float32, -bound, bound)
    b_lin = jnp.zeros((1, NUM_CLASSES), jnp.float32)

    # ---- Inference-time fold: embeddings @ W_ih, plus fused gate biases. ----
    # padding_idx rows are zero, so zero-row @ W_ih stays zero (semantics preserved).
    word_proj = word_tab @ w_ih_t[:WORD_DIM]                              # (11000, 384)
    ub_proj = ub_tab @ w_ih_t[WORD_DIM:WORD_DIM + UB_DIM]                 # (5, 384)
    cur_proj = cur_tab @ w_ih_t[WORD_DIM + UB_DIM:]                       # (3, 384)
    gate_bias = jnp.concatenate(
        [b_ih[:2 * HIDDEN] + b_hh[:2 * HIDDEN], b_ih[2 * HIDDEN:]])       # (384,)
    b_hh_n = b_hh[2 * HIDDEN:].reshape(1, HIDDEN)                         # (1, 128)

    return dict(word_proj=word_proj, ub_proj=ub_proj, cur_proj=cur_proj,
                gate_bias=gate_bias,
                w_hh_bf16=w_hh_t.astype(jnp.bfloat16),     # recurrent MXU operand
                b_hh_n=b_hh_n, w_lin_t=w_lin_t, b_lin=b_lin)


@functools.partial(jax.jit, static_argnames=("calc_softmax",))
def utterance_model_forward(params, inp, calc_softmax=False):
    """inp: int32 (B, 3, T) — rows: word ids, user/bot ids, cur ids.

    Returns (hidden (1, B, 128), output (B, 3)) mirroring the PyTorch forward
    with a zero initial GRU hidden state.
    """
    B, _, T = inp.shape
    if T == 0:  # empty sequence guard: GRU of an empty seq keeps the zero hidden
        hidden = jnp.zeros((B, HIDDEN), jnp.float32)
    else:
        # gx[t, b, :] = x_{b,t} @ W_ih^T + b_ih (+ b_hh for the r/z slices),
        # built time-major directly from the pre-projected embedding tables.
        word_ids = inp[:, 0, :].T                                   # (T, B)
        ub_ids = inp[:, 1, :].T
        cur_ids = inp[:, 2, :].T
        gx = (jnp.take(params["word_proj"], word_ids, axis=0)
              + jnp.take(params["ub_proj"], ub_ids, axis=0)
              + jnp.take(params["cur_proj"], cur_ids, axis=0)
              + params["gate_bias"])                                # (T, B, 384) f32
        gx = gx.astype(jnp.bfloat16)                                # stream bf16 to kernel
        hidden = gru_pallas(gx, params["w_hh_bf16"], params["b_hh_n"])   # (B, 128)

    # Final Linear(128->3) on the hidden state (cheap one-shot; kept in XLA).
    logits = hidden @ params["w_lin_t"] + params["b_lin"]           # (B, 3)
    hidden = hidden[None, :, :]                                     # (1, B, 128)
    if calc_softmax:
        return hidden, jax.nn.log_softmax(logits, axis=-1)
    return hidden, logits


if __name__ == "__main__":
    key = jax.random.PRNGKey(0)
    pkey, dkey = jax.random.split(key)
    params = init_params(pkey)

    B, T = 2, 8
    k1, k2, k3 = jax.random.split(dkey, 3)
    word_ids = jax.random.randint(k1, (B, T), 0, WORD_VOCAB, jnp.int32)
    ub_ids = jax.random.randint(k2, (B, T), 0, UB_VOCAB, jnp.int32)
    cur_ids = jax.random.randint(k3, (B, T), 0, CUR_VOCAB, jnp.int32)
    inp = jnp.stack([word_ids, ub_ids, cur_ids], axis=1)            # (B, 3, T)

    hidden, output = utterance_model_forward(params, inp, calc_softmax=False)
    jax.block_until_ready((hidden, output))

    hidden2, probs = utterance_model_forward(params, inp, calc_softmax=True)
    jax.block_until_ready((hidden2, probs))

    assert hidden.shape == (1, B, HIDDEN)
    assert output.shape == (B, NUM_CLASSES)
    assert probs.shape == (B, NUM_CLASSES)
    assert bool(jnp.all(jnp.isfinite(output))) and bool(jnp.all(jnp.isfinite(probs)))
    print("KERNEL_OK")
</pallas_src>

<mosaic_0001>
module attributes {stable_mosaic.version = 11 : i64} {
  func.func @_gru_kernel(%arg0: i32, %arg1: i32, %arg2: memref<8x8x384xbf16, #tpu.memory_space<vmem>>, %arg3: memref<128x384xbf16, #tpu.memory_space<vmem>>, %arg4: memref<1x128xf32, #tpu.memory_space<vmem>>, %arg5: memref<8x128xf32, #tpu.memory_space<vmem>>) attributes {dimension_semantics = [#tpu.dimension_semantics<parallel>, #tpu.dimension_semantics<arbitrary>], iteration_bounds = array<i64: 1, 1>, scalar_prefetch = 0 : i64, scratch_operands = 0 : i64, tpu.core_type = #tpu.core_type<tc>, window_params = [{transform_indices = @transform_0, window_bounds = array<i64: 8, 8, 384>}, {pipeline_mode = #tpu.pipeline_mode<synchronous>, transform_indices = @transform_1, window_bounds = array<i64: 128, 384>}, {pipeline_mode = #tpu.pipeline_mode<synchronous>, transform_indices = @transform_2, window_bounds = array<i64: 1, 128>}, {transform_indices = @transform_3, window_bounds = array<i64: 8, 128>}]} {
    %c0_i32 = arith.constant 0 : i32
    %0 = arith.cmpi eq, %arg1, %c0_i32 : i32
    %1 = arith.extui %0 : i1 to i32
    %c0_i32_0 = arith.constant 0 : i32
    %2 = arith.cmpi ne, %1, %c0_i32_0 : i32
    scf.if %2 {
      %cst_70 = arith.constant 0.000000e+00 : f32
      %280 = vector.broadcast %cst_70 : f32 to vector<8x128xf32>
      %c0_71 = arith.constant 0 : index
      %c0_72 = arith.constant 0 : index
      %281 = vector.load %arg5[%c0_71, %c0_72] : memref<8x128xf32, #tpu.memory_space<vmem>>, vector<8x128xf32>
      tpu.vector_store %arg5[%c0_71, %c0_72], %280 {strides = array<i32>} : memref<8x128xf32, #tpu.memory_space<vmem>>, vector<8x128xf32>,
    } else {
    }
    %c0 = arith.constant 0 : index
    %c0_1 = arith.constant 0 : index
    %3 = vector.load %arg4[%c0, %c0_1] : memref<1x128xf32, #tpu.memory_space<vmem>>, vector<1x128xf32>
    %4 = vector.shape_cast %3 : vector<1x128xf32> to vector<1x128xf32>
    %5 = vector.broadcast %4 : vector<1x128xf32> to vector<8x128xf32>
    %c0_2 = arith.constant 0 : index
    %c0_3 = arith.constant 0 : index
    %6 = vector.load %arg5[%c0_2, %c0_3] : memref<8x128xf32, #tpu.memory_space<vmem>>, vector<8x128xf32>
    %c0_i32_4 = arith.constant 0 : i32
    %7 = arith.index_cast %c0_i32_4 : i32 to index
    %c0_5 = arith.constant 0 : index
    %c0_6 = arith.constant 0 : index
    %8 = vector.load %arg2[%7, %c0_5, %c0_6] : memref<8x8x384xbf16, #tpu.memory_space<vmem>>, vector<1x8x384xbf16>
    %9 = vector.shape_cast %8 : vector<1x8x384xbf16> to vector<8x384xbf16>
    %10 = arith.extf %9 : vector<8x384xbf16> to vector<8x384xf32>
    %11 = arith.truncf %6 : vector<8x128xf32> to vector<8x128xbf16>
    %c0_7 = arith.constant 0 : index
    %c0_8 = arith.constant 0 : index
    %12 = vector.load %arg3[%c0_7, %c0_8] : memref<128x384xbf16, #tpu.memory_space<vmem>>, vector<128x384xbf16>
    %cst = arith.constant dense<0.000000e+00> : vector<8x384xf32>
    %13 = tpu.matmul %11, %12, %cst {dimension_numbers = #tpu.dot_dimension_numbers<[1], [0], [0], [1], [0, 0, 1, 1], [], []>} : vector<8x128xbf16>, vector<128x384xbf16>, vector<8x384xf32> -> vector<8x384xf32>
    %14 = vector.extract_strided_slice %10 {offsets = [0, 0], sizes = [8, 128], strides = [1, 1]} : vector<8x384xf32> to vector<8x128xf32>
    %15 = vector.extract_strided_slice %13 {offsets = [0, 0], sizes = [8, 128], strides = [1, 1]} : vector<8x384xf32> to vector<8x128xf32>
    %16 = arith.addf %14, %15 : vector<8x128xf32>
    %17 = arith.negf %16 : vector<8x128xf32>
    %18 = math.exp %17 : vector<8x128xf32>
    %cst_9 = arith.constant 1.000000e+00 : f32
    %19 = vector.broadcast %cst_9 : f32 to vector<8x128xf32>
    %20 = arith.addf %19, %18 : vector<8x128xf32>
    %21 = arith.divf %19, %20 : vector<8x128xf32>
    %22 = vector.extract_strided_slice %10 {offsets = [0, 128], sizes = [8, 128], strides = [1, 1]} : vector<8x384xf32> to vector<8x128xf32>
    %23 = vector.extract_strided_slice %13 {offsets = [0, 128], sizes = [8, 128], strides = [1, 1]} : vector<8x384xf32> to vector<8x128xf32>
    %24 = arith.addf %22, %23 : vector<8x128xf32>
    %25 = arith.negf %24 : vector<8x128xf32>
    %26 = math.exp %25 : vector<8x128xf32>
    %cst_10 = arith.constant 1.000000e+00 : f32
    %27 = vector.broadcast %cst_10 : f32 to vector<8x128xf32>
    %28 = arith.addf %27, %26 : vector<8x128xf32>
    %29 = arith.divf %27, %28 : vector<8x128xf32>
    %30 = vector.extract_strided_slice %10 {offsets = [0, 256], sizes = [8, 128], strides = [1, 1]} : vector<8x384xf32> to vector<8x128xf32>
    %31 = vector.extract_strided_slice %13 {offsets = [0, 256], sizes = [8, 128], strides = [1, 1]} : vector<8x384xf32> to vector<8x128xf32>
    %32 = arith.addf %31, %5 : vector<8x128xf32>
    %33 = arith.mulf %21, %32 : vector<8x128xf32>
    %34 = arith.addf %30, %33 : vector<8x128xf32>
    %35 = math.tanh %34 : vector<8x128xf32>
    %cst_11 = arith.constant 1.000000e+00 : f32
    %36 = vector.broadcast %cst_11 : f32 to vector<8x128xf32>
    %37 = arith.subf %36, %29 : vector<8x128xf32>
    %38 = arith.mulf %37, %35 : vector<8x128xf32>
    %39 = arith.mulf %29, %6 : vector<8x128xf32>
    %40 = arith.addf %38, %39 : vector<8x128xf32>
    %c1_i32 = arith.constant 1 : i32
    %41 = arith.index_cast %c1_i32 : i32 to index
    %c0_12 = arith.constant 0 : index
    %c0_13 = arith.constant 0 : index
    %42 = vector.load %arg2[%41, %c0_12, %c0_13] : memref<8x8x384xbf16, #tpu.memory_space<vmem>>, vector<1x8x384xbf16>
    %43 = vector.shape_cast %42 : vector<1x8x384xbf16> to vector<8x384xbf16>
    %44 = arith.extf %43 : vector<8x384xbf16> to vector<8x384xf32>
    %45 = arith.truncf %40 : vector<8x128xf32> to vector<8x128xbf16>
    %c0_14 = arith.constant 0 : index
    %c0_15 = arith.constant 0 : index
    %46 = vector.load %arg3[%c0_14, %c0_15] : memref<128x384xbf16, #tpu.memory_space<vmem>>, vector<128x384xbf16>
    %cst_16 = arith.constant dense<0.000000e+00> : vector<8x384xf32>
    %47 = tpu.matmul %45, %46, %cst_16 {dimension_numbers = #tpu.dot_dimension_numbers<[1], [0], [0], [1], [0, 0, 1, 1], [], []>} : vector<8x128xbf16>, vector<128x384xbf16>, vector<8x384xf32> -> vector<8x384xf32>
    %48 = vector.extract_strided_slice %44 {offsets = [0, 0], sizes = [8, 128], strides = [1, 1]} : vector<8x384xf32> to vector<8x128xf32>
    %49 = vector.extract_strided_slice %47 {offsets = [0, 0], sizes = [8, 128], strides = [1, 1]} : vector<8x384xf32> to vector<8x128xf32>
    %50 = arith.addf %48, %49 : vector<8x128xf32>
    %51 = arith.negf %50 : vector<8x128xf32>
    %52 = math.exp %51 : vector<8x128xf32>
    %cst_17 = arith.constant 1.000000e+00 : f32
    %53 = vector.broadcast %cst_17 : f32 to vector<8x128xf32>
    %54 = arith.addf %53, %52 : vector<8x128xf32>
    %55 = arith.divf %53, %54 : vector<8x128xf32>
    %56 = vector.extract_strided_slice %44 {offsets = [0, 128], sizes = [8, 128], strides = [1, 1]} : vector<8x384xf32> to vector<8x128xf32>
    %57 = vector.extract_strided_slice %47 {offsets = [0, 128], sizes = [8, 128], strides = [1, 1]} : vector<8x384xf32> to vector<8x128xf32>
    %58 = arith.addf %56, %57 : vector<8x128xf32>
    %59 = arith.negf %58 : vector<8x128xf32>
    %60 = math.exp %59 : vector<8x128xf32>
    %cst_18 = arith.constant 1.000000e+00 : f32
    %61 = vector.broadcast %cst_18 : f32 to vector<8x128xf32>
    %62 = arith.addf %61, %60 : vector<8x128xf32>
    %63 = arith.divf %61, %62 : vector<8x128xf32>
    %64 = vector.extract_strided_slice %44 {offsets = [0, 256], sizes = [8, 128], strides = [1, 1]} : vector<8x384xf32> to vector<8x128xf32>
    %65 = vector.extract_strided_slice %47 {offsets = [0, 256], sizes = [8, 128], strides = [1, 1]} : vector<8x384xf32> to vector<8x128xf32>
    %66 = arith.addf %65, %5 : vector<8x128xf32>
    %67 = arith.mulf %55, %66 : vector<8x128xf32>
    %68 = arith.addf %64, %67 : vector<8x128xf32>
    %69 = math.tanh %68 : vector<8x128xf32>
    %cst_19 = arith.constant 1.000000e+00 : f32
    %70 = vector.broadcast %cst_19 : f32 to vector<8x128xf32>
    %71 = arith.subf %70, %63 : vector<8x128xf32>
    %72 = arith.mulf %71, %69 : vector<8x128xf32>
    %73 = arith.mulf %63, %40 : vector<8x128xf32>
    %74 = arith.addf %72, %73 : vector<8x128xf32>
    %c2_i32 = arith.constant 2 : i32
    %75 = arith.index_cast %c2_i32 : i32 to index
    %c0_20 = arith.constant 0 : index
    %c0_21 = arith.constant 0 : index
    %76 = vector.load %arg2[%75, %c0_20, %c0_21] : memref<8x8x384xbf16, #tpu.memory_space<vmem>>, vector<1x8x384xbf16>
    %77 = vector.shape_cast %76 : vector<1x8x384xbf16> to vector<8x384xbf16>
    %78 = arith.extf %77 : vector<8x384xbf16> to vector<8x384xf32>
    %79 = arith.truncf %74 : vector<8x128xf32> to vector<8x128xbf16>
    %c0_22 = arith.constant 0 : index
    %c0_23 = arith.constant 0 : index
    %80 = vector.load %arg3[%c0_22, %c0_23] : memref<128x384xbf16, #tpu.memory_space<vmem>>, vector<128x384xbf16>
    %cst_24 = arith.constant dense<0.000000e+00> : vector<8x384xf32>
    %81 = tpu.matmul %79, %80, %cst_24 {dimension_numbers = #tpu.dot_dimension_numbers<[1], [0], [0], [1], [0, 0, 1, 1], [], []>} : vector<8x128xbf16>, vector<128x384xbf16>, vector<8x384xf32> -> vector<8x384xf32>
    %82 = vector.extract_strided_slice %78 {offsets = [0, 0], sizes = [8, 128], strides = [1, 1]} : vector<8x384xf32> to vector<8x128xf32>
    %83 = vector.extract_strided_slice %81 {offsets = [0, 0], sizes = [8, 128], strides = [1, 1]} : vector<8x384xf32> to vector<8x128xf32>
    %84 = arith.addf %82, %83 : vector<8x128xf32>
    %85 = arith.negf %84 : vector<8x128xf32>
    %86 = math.exp %85 : vector<8x128xf32>
    %cst_25 = arith.constant 1.000000e+00 : f32
    %87 = vector.broadcast %cst_25 : f32 to vector<8x128xf32>
    %88 = arith.addf %87, %86 : vector<8x128xf32>
    %89 = arith.divf %87, %88 : vector<8x128xf32>
    %90 = vector.extract_strided_slice %78 {offsets = [0, 128], sizes = [8, 128], strides = [1, 1]} : vector<8x384xf32> to vector<8x128xf32>
    %91 = vector.extract_strided_slice %81 {offsets = [0, 128], sizes = [8, 128], strides = [1, 1]} : vector<8x384xf32> to vector<8x128xf32>
    %92 = arith.addf %90, %91 : vector<8x128xf32>
    %93 = arith.negf %92 : vector<8x128xf32>
    %94 = math.exp %93 : vector<8x128xf32>
    %cst_26 = arith.constant 1.000000e+00 : f32
    %95 = vector.broadcast %cst_26 : f32 to vector<8x128xf32>
    %96 = arith.addf %95, %94 : vector<8x128xf32>
    %97 = arith.divf %95, %96 : vector<8x128xf32>
    %98 = vector.extract_strided_slice %78 {offsets = [0, 256], sizes = [8, 128], strides = [1, 1]} : vector<8x384xf32> to vector<8x128xf32>
    %99 = vector.extract_strided_slice %81 {offsets = [0, 256], sizes = [8, 128], strides = [1, 1]} : vector<8x384xf32> to vector<8x128xf32>
    %100 = arith.addf %99, %5 : vector<8x128xf32>
    %101 = arith.mulf %89, %100 : vector<8x128xf32>
    %102 = arith.addf %98, %101 : vector<8x128xf32>
    %103 = math.tanh %102 : vector<8x128xf32>
    %cst_27 = arith.constant 1.000000e+00 : f32
    %104 = vector.broadcast %cst_27 : f32 to vector<8x128xf32>
    %105 = arith.subf %104, %97 : vector<8x128xf32>
    %106 = arith.mulf %105, %103 : vector<8x128xf32>
    %107 = arith.mulf %97, %74 : vector<8x128xf32>
    %108 = arith.addf %106, %107 : vector<8x128xf32>
    %c3_i32 = arith.constant 3 : i32
    %109 = arith.index_cast %c3_i32 : i32 to index
    %c0_28 = arith.constant 0 : index
    %c0_29 = arith.constant 0 : index
    %110 = vector.load %arg2[%109, %c0_28, %c0_29] : memref<8x8x384xbf16, #tpu.memory_space<vmem>>, vector<1x8x384xbf16>
    %111 = vector.shape_cast %110 : vector<1x8x384xbf16> to vector<8x384xbf16>
    %112 = arith.extf %111 : vector<8x384xbf16> to vector<8x384xf32>
    %113 = arith.truncf %108 : vector<8x128xf32> to vector<8x128xbf16>
    %c0_30 = arith.constant 0 : index
    %c0_31 = arith.constant 0 : index
    %114 = vector.load %arg3[%c0_30, %c0_31] : memref<128x384xbf16, #tpu.memory_space<vmem>>, vector<128x384xbf16>
    %cst_32 = arith.constant dense<0.000000e+00> : vector<8x384xf32>
    %115 = tpu.matmul %113, %114, %cst_32 {dimension_numbers = #tpu.dot_dimension_numbers<[1], [0], [0], [1], [0, 0, 1, 1], [], []>} : vector<8x128xbf16>, vector<128x384xbf16>, vector<8x384xf32> -> vector<8x384xf32>
    %116 = vector.extract_strided_slice %112 {offsets = [0, 0], sizes = [8, 128], strides = [1, 1]} : vector<8x384xf32> to vector<8x128xf32>
    %117 = vector.extract_strided_slice %115 {offsets = [0, 0], sizes = [8, 128], strides = [1, 1]} : vector<8x384xf32> to vector<8x128xf32>
    %118 = arith.addf %116, %117 : vector<8x128xf32>
    %119 = arith.negf %118 : vector<8x128xf32>
    %120 = math.exp %119 : vector<8x128xf32>
    %cst_33 = arith.constant 1.000000e+00 : f32
    %121 = vector.broadcast %cst_33 : f32 to vector<8x128xf32>
    %122 = arith.addf %121, %120 : vector<8x128xf32>
    %123 = arith.divf %121, %122 : vector<8x128xf32>
    %124 = vector.extract_strided_slice %112 {offsets = [0, 128], sizes = [8, 128], strides = [1, 1]} : vector<8x384xf32> to vector<8x128xf32>
    %125 = vector.extract_strided_slice %115 {offsets = [0, 128], sizes = [8, 128], strides = [1, 1]} : vector<8x384xf32> to vector<8x128xf32>
    %126 = arith.addf %124, %125 : vector<8x128xf32>
    %127 = arith.negf %126 : vector<8x128xf32>
    %128 = math.exp %127 : vector<8x128xf32>
    %cst_34 = arith.constant 1.000000e+00 : f32
    %129 = vector.broadcast %cst_34 : f32 to vector<8x128xf32>
    %130 = arith.addf %129, %128 : vector<8x128xf32>
    %131 = arith.divf %129, %130 : vector<8x128xf32>
    %132 = vector.extract_strided_slice %112 {offsets = [0, 256], sizes = [8, 128], strides = [1, 1]} : vector<8x384xf32> to vector<8x128xf32>
    %133 = vector.extract_strided_slice %115 {offsets = [0, 256], sizes = [8, 128], strides = [1, 1]} : vector<8x384xf32> to vector<8x128xf32>
    %134 = arith.addf %133, %5 : vector<8x128xf32>
    %135 = arith.mulf %123, %134 : vector<8x128xf32>
    %136 = arith.addf %132, %135 : vector<8x128xf32>
    %137 = math.tanh %136 : vector<8x128xf32>
    %cst_35 = arith.constant 1.000000e+00 : f32
    %138 = vector.broadcast %cst_35 : f32 to vector<8x128xf32>
    %139 = arith.subf %138, %131 : vector<8x128xf32>
    %140 = arith.mulf %139, %137 : vector<8x128xf32>
    %141 = arith.mulf %131, %108 : vector<8x128xf32>
    %142 = arith.addf %140, %141 : vector<8x128xf32>
    %c4_i32 = arith.constant 4 : i32
    %143 = arith.index_cast %c4_i32 : i32 to index
    %c0_36 = arith.constant 0 : index
    %c0_37 = arith.constant 0 : index
    %144 = vector.load %arg2[%143, %c0_36, %c0_37] : memref<8x8x384xbf16, #tpu.memory_space<vmem>>, vector<1x8x384xbf16>
    %145 = vector.shape_cast %144 : vector<1x8x384xbf16> to vector<8x384xbf16>
    %146 = arith.extf %145 : vector<8x384xbf16> to vector<8x384xf32>
    %147 = arith.truncf %142 : vector<8x128xf32> to vector<8x128xbf16>
    %c0_38 = arith.constant 0 : index
    %c0_39 = arith.constant 0 : index
    %148 = vector.load %arg3[%c0_38, %c0_39] : memref<128x384xbf16, #tpu.memory_space<vmem>>, vector<128x384xbf16>
    %cst_40 = arith.constant dense<0.000000e+00> : vector<8x384xf32>
    %149 = tpu.matmul %147, %148, %cst_40 {dimension_numbers = #tpu.dot_dimension_numbers<[1], [0], [0], [1], [0, 0, 1, 1], [], []>} : vector<8x128xbf16>, vector<128x384xbf16>, vector<8x384xf32> -> vector<8x384xf32>
    %150 = vector.extract_strided_slice %146 {offsets = [0, 0], sizes = [8, 128], strides = [1, 1]} : vector<8x384xf32> to vector<8x128xf32>
    %151 = vector.extract_strided_slice %149 {offsets = [0, 0], sizes = [8, 128], strides = [1, 1]} : vector<8x384xf32> to vector<8x128xf32>
    %152 = arith.addf %150, %151 : vector<8x128xf32>
    %153 = arith.negf %152 : vector<8x128xf32>
    %154 = math.exp %153 : vector<8x128xf32>
    %cst_41 = arith.constant 1.000000e+00 : f32
    %155 = vector.broadcast %cst_41 : f32 to vector<8x128xf32>
    %156 = arith.addf %155, %154 : vector<8x128xf32>
    %157 = arith.divf %155, %156 : vector<8x128xf32>
    %158 = vector.extract_strided_slice %146 {offsets = [0, 128], sizes = [8, 128], strides = [1, 1]} : vector<8x384xf32> to vector<8x128xf32>
    %159 = vector.extract_strided_slice %149 {offsets = [0, 128], sizes = [8, 128], strides = [1, 1]} : vector<8x384xf32> to vector<8x128xf32>
    %160 = arith.addf %158, %159 : vector<8x128xf32>
    %161 = arith.negf %160 : vector<8x128xf32>
    %162 = math.exp %161 : vector<8x128xf32>
    %cst_42 = arith.constant 1.000000e+00 : f32
    %163 = vector.broadcast %cst_42 : f32 to vector<8x128xf32>
    %164 = arith.addf %163, %162 : vector<8x128xf32>
    %165 = arith.divf %163, %164 : vector<8x128xf32>
    %166 = vector.extract_strided_slice %146 {offsets = [0, 256], sizes = [8, 128], strides = [1, 1]} : vector<8x384xf32> to vector<8x128xf32>
    %167 = vector.extract_strided_slice %149 {offsets = [0, 256], sizes = [8, 128], strides = [1, 1]} : vector<8x384xf32> to vector<8x128xf32>
    %168 = arith.addf %167, %5 : vector<8x128xf32>
    %169 = arith.mulf %157, %168 : vector<8x128xf32>
    %170 = arith.addf %166, %169 : vector<8x128xf32>
    %171 = math.tanh %170 : vector<8x128xf32>
    %cst_43 = arith.constant 1.000000e+00 : f32
    %172 = vector.broadcast %cst_43 : f32 to vector<8x128xf32>
    %173 = arith.subf %172, %165 : vector<8x128xf32>
    %174 = arith.mulf %173, %171 : vector<8x128xf32>
    %175 = arith.mulf %165, %142 : vector<8x128xf32>
    %176 = arith.addf %174, %175 : vector<8x128xf32>
    %c5_i32 = arith.constant 5 : i32
    %177 = arith.index_cast %c5_i32 : i32 to index
    %c0_44 = arith.constant 0 : index
    %c0_45 = arith.constant 0 : index
    %178 = vector.load %arg2[%177, %c0_44, %c0_45] : memref<8x8x384xbf16, #tpu.memory_space<vmem>>, vector<1x8x384xbf16>
    %179 = vector.shape_cast %178 : vector<1x8x384xbf16> to vector<8x384xbf16>
    %180 = arith.extf %179 : vector<8x384xbf16> to vector<8x384xf32>
    %181 = arith.truncf %176 : vector<8x128xf32> to vector<8x128xbf16>
    %c0_46 = arith.constant 0 : index
    %c0_47 = arith.constant 0 : index
    %182 = vector.load %arg3[%c0_46, %c0_47] : memref<128x384xbf16, #tpu.memory_space<vmem>>, vector<128x384xbf16>
    %cst_48 = arith.constant dense<0.000000e+00> : vector<8x384xf32>
    %183 = tpu.matmul %181, %182, %cst_48 {dimension_numbers = #tpu.dot_dimension_numbers<[1], [0], [0], [1], [0, 0, 1, 1], [], []>} : vector<8x128xbf16>, vector<128x384xbf16>, vector<8x384xf32> -> vector<8x384xf32>
    %184 = vector.extract_strided_slice %180 {offsets = [0, 0], sizes = [8, 128], strides = [1, 1]} : vector<8x384xf32> to vector<8x128xf32>
    %185 = vector.extract_strided_slice %183 {offsets = [0, 0], sizes = [8, 128], strides = [1, 1]} : vector<8x384xf32> to vector<8x128xf32>
    %186 = arith.addf %184, %185 : vector<8x128xf32>
    %187 = arith.negf %186 : vector<8x128xf32>
    %188 = math.exp %187 : vector<8x128xf32>
    %cst_49 = arith.constant 1.000000e+00 : f32
    %189 = vector.broadcast %cst_49 : f32 to vector<8x128xf32>
    %190 = arith.addf %189, %188 : vector<8x128xf32>
    %191 = arith.divf %189, %190 : vector<8x128xf32>
    %192 = vector.extract_strided_slice %180 {offsets = [0, 128], sizes = [8, 128], strides = [1, 1]} : vector<8x384xf32> to vector<8x128xf32>
    %193 = vector.extract_strided_slice %183 {offsets = [0, 128], sizes = [8, 128], strides = [1, 1]} : vector<8x384xf32> to vector<8x128xf32>
    %194 = arith.addf %192, %193 : vector<8x128xf32>
    %195 = arith.negf %194 : vector<8x128xf32>
    %196 = math.exp %195 : vector<8x128xf32>
    %cst_50 = arith.constant 1.000000e+00 : f32
    %197 = vector.broadcast %cst_50 : f32 to vector<8x128xf32>
    %198 = arith.addf %197, %196 : vector<8x128xf32>
    %199 = arith.divf %197, %198 : vector<8x128xf32>
    %200 = vector.extract_strided_slice %180 {offsets = [0, 256], sizes = [8, 128], strides = [1, 1]} : vector<8x384xf32> to vector<8x128xf32>
    %201 = vector.extract_strided_slice %183 {offsets = [0, 256], sizes = [8, 128], strides = [1, 1]} : vector<8x384xf32> to vector<8x128xf32>
    %202 = arith.addf %201, %5 : vector<8x128xf32>
    %203 = arith.mulf %191, %202 : vector<8x128xf32>
    %204 = arith.addf %200, %203 : vector<8x128xf32>
    %205 = math.tanh %204 : vector<8x128xf32>
    %cst_51 = arith.constant 1.000000e+00 : f32
    %206 = vector.broadcast %cst_51 : f32 to vector<8x128xf32>
    %207 = arith.subf %206, %199 : vector<8x128xf32>
    %208 = arith.mulf %207, %205 : vector<8x128xf32>
    %209 = arith.mulf %199, %176 : vector<8x128xf32>
    %210 = arith.addf %208, %209 : vector<8x128xf32>
    %c6_i32 = arith.constant 6 : i32
    %211 = arith.index_cast %c6_i32 : i32 to index
    %c0_52 = arith.constant 0 : index
    %c0_53 = arith.constant 0 : index
    %212 = vector.load %arg2[%211, %c0_52, %c0_53] : memref<8x8x384xbf16, #tpu.memory_space<vmem>>, vector<1x8x384xbf16>
    %213 = vector.shape_cast %212 : vector<1x8x384xbf16> to vector<8x384xbf16>
    %214 = arith.extf %213 : vector<8x384xbf16> to vector<8x384xf32>
    %215 = arith.truncf %210 : vector<8x128xf32> to vector<8x128xbf16>
    %c0_54 = arith.constant 0 : index
    %c0_55 = arith.constant 0 : index
    %216 = vector.load %arg3[%c0_54, %c0_55] : memref<128x384xbf16, #tpu.memory_space<vmem>>, vector<128x384xbf16>
    %cst_56 = arith.constant dense<0.000000e+00> : vector<8x384xf32>
    %217 = tpu.matmul %215, %216, %cst_56 {dimension_numbers = #tpu.dot_dimension_numbers<[1], [0], [0], [1], [0, 0, 1, 1], [], []>} : vector<8x128xbf16>, vector<128x384xbf16>, vector<8x384xf32> -> vector<8x384xf32>
    %218 = vector.extract_strided_slice %214 {offsets = [0, 0], sizes = [8, 128], strides = [1, 1]} : vector<8x384xf32> to vector<8x128xf32>
    %219 = vector.extract_strided_slice %217 {offsets = [0, 0], sizes = [8, 128], strides = [1, 1]} : vector<8x384xf32> to vector<8x128xf32>
    %220 = arith.addf %218, %219 : vector<8x128xf32>
    %221 = arith.negf %220 : vector<8x128xf32>
    %222 = math.exp %221 : vector<8x128xf32>
    %cst_57 = arith.constant 1.000000e+00 : f32
    %223 = vector.broadcast %cst_57 : f32 to vector<8x128xf32>
    %224 = arith.addf %223, %222 : vector<8x128xf32>
    %225 = arith.divf %223, %224 : vector<8x128xf32>
    %226 = vector.extract_strided_slice %214 {offsets = [0, 128], sizes = [8, 128], strides = [1, 1]} : vector<8x384xf32> to vector<8x128xf32>
    %227 = vector.extract_strided_slice %217 {offsets = [0, 128], sizes = [8, 128], strides = [1, 1]} : vector<8x384xf32> to vector<8x128xf32>
    %228 = arith.addf %226, %227 : vector<8x128xf32>
    %229 = arith.negf %228 : vector<8x128xf32>
    %230 = math.exp %229 : vector<8x128xf32>
    %cst_58 = arith.constant 1.000000e+00 : f32
    %231 = vector.broadcast %cst_58 : f32 to vector<8x128xf32>
    %232 = arith.addf %231, %230 : vector<8x128xf32>
    %233 = arith.divf %231, %232 : vector<8x128xf32>
    %234 = vector.extract_strided_slice %214 {offsets = [0, 256], sizes = [8, 128], strides = [1, 1]} : vector<8x384xf32> to vector<8x128xf32>
    %235 = vector.extract_strided_slice %217 {offsets = [0, 256], sizes = [8, 128], strides = [1, 1]} : vector<8x384xf32> to vector<8x128xf32>
    %236 = arith.addf %235, %5 : vector<8x128xf32>
    %237 = arith.mulf %225, %236 : vector<8x128xf32>
    %238 = arith.addf %234, %237 : vector<8x128xf32>
    %239 = math.tanh %238 : vector<8x128xf32>
    %cst_59 = arith.constant 1.000000e+00 : f32
    %240 = vector.broadcast %cst_59 : f32 to vector<8x128xf32>
    %241 = arith.subf %240, %233 : vector<8x128xf32>
    %242 = arith.mulf %241, %239 : vector<8x128xf32>
    %243 = arith.mulf %233, %210 : vector<8x128xf32>
    %244 = arith.addf %242, %243 : vector<8x128xf32>
    %c7_i32 = arith.constant 7 : i32
    %245 = arith.index_cast %c7_i32 : i32 to index
    %c0_60 = arith.constant 0 : index
    %c0_61 = arith.constant 0 : index
    %246 = vector.load %arg2[%245, %c0_60, %c0_61] : memref<8x8x384xbf16, #tpu.memory_space<vmem>>, vector<1x8x384xbf16>
    %247 = vector.shape_cast %246 : vector<1x8x384xbf16> to vector<8x384xbf16>
    %248 = arith.extf %247 : vector<8x384xbf16> to vector<8x384xf32>
    %249 = arith.truncf %244 : vector<8x128xf32> to vector<8x128xbf16>
    %c0_62 = arith.constant 0 : index
    %c0_63 = arith.constant 0 : index
    %250 = vector.load %arg3[%c0_62, %c0_63] : memref<128x384xbf16, #tpu.memory_space<vmem>>, vector<128x384xbf16>
    %cst_64 = arith.constant dense<0.000000e+00> : vector<8x384xf32>
    %251 = tpu.matmul %249, %250, %cst_64 {dimension_numbers = #tpu.dot_dimension_numbers<[1], [0], [0], [1], [0, 0, 1, 1], [], []>} : vector<8x128xbf16>, vector<128x384xbf16>, vector<8x384xf32> -> vector<8x384xf32>
    %252 = vector.extract_strided_slice %248 {offsets = [0, 0], sizes = [8, 128], strides = [1, 1]} : vector<8x384xf32> to vector<8x128xf32>
    %253 = vector.extract_strided_slice %251 {offsets = [0, 0], sizes = [8, 128], strides = [1, 1]} : vector<8x384xf32> to vector<8x128xf32>
    %254 = arith.addf %252, %253 : vector<8x128xf32>
    %255 = arith.negf %254 : vector<8x128xf32>
    %256 = math.exp %255 : vector<8x128xf32>
    %cst_65 = arith.constant 1.000000e+00 : f32
    %257 = vector.broadcast %cst_65 : f32 to vector<8x128xf32>
    %258 = arith.addf %257, %256 : vector<8x128xf32>
    %259 = arith.divf %257, %258 : vector<8x128xf32>
    %260 = vector.extract_strided_slice %248 {offsets = [0, 128], sizes = [8, 128], strides = [1, 1]} : vector<8x384xf32> to vector<8x128xf32>
    %261 = vector.extract_strided_slice %251 {offsets = [0, 128], sizes = [8, 128], strides = [1, 1]} : vector<8x384xf32> to vector<8x128xf32>
    %262 = arith.addf %260, %261 : vector<8x128xf32>
    %263 = arith.negf %262 : vector<8x128xf32>
    %264 = math.exp %263 : vector<8x128xf32>
    %cst_66 = arith.constant 1.000000e+00 : f32
    %265 = vector.broadcast %cst_66 : f32 to vector<8x128xf32>
    %266 = arith.addf %265, %264 : vector<8x128xf32>
    %267 = arith.divf %265, %266 : vector<8x128xf32>
    %268 = vector.extract_strided_slice %248 {offsets = [0, 256], sizes = [8, 128], strides = [1, 1]} : vector<8x384xf32> to vector<8x128xf32>
    %269 = vector.extract_strided_slice %251 {offsets = [0, 256], sizes = [8, 128], strides = [1, 1]} : vector<8x384xf32> to vector<8x128xf32>
    %270 = arith.addf %269, %5 : vector<8x128xf32>
    %271 = arith.mulf %259, %270 : vector<8x128xf32>
    %272 = arith.addf %268, %271 : vector<8x128xf32>
    %273 = math.tanh %272 : vector<8x128xf32>
    %cst_67 = arith.constant 1.000000e+00 : f32
    %274 = vector.broadcast %cst_67 : f32 to vector<8x128xf32>
    %275 = arith.subf %274, %267 : vector<8x128xf32>
    %276 = arith.mulf %275, %273 : vector<8x128xf32>
    %277 = arith.mulf %267, %244 : vector<8x128xf32>
    %278 = arith.addf %276, %277 : vector<8x128xf32>
    %c8_i32 = arith.constant 8 : i32
    %c0_68 = arith.constant 0 : index
    %c0_69 = arith.constant 0 : index
    %279 = vector.load %arg5[%c0_68, %c0_69] : memref<8x128xf32, #tpu.memory_space<vmem>>, vector<8x128xf32>
    tpu.vector_store %arg5[%c0_68, %c0_69], %278 {strides = array<i32>} : memref<8x128xf32, #tpu.memory_space<vmem>>, vector<8x128xf32>,
    return
  }
  func.func @transform_0(%arg0: i32, %arg1: i32) -> (i32, i32, i32) {
    %c0_i32 = arith.constant 0 : i32
    %c0_i32_0 = arith.constant 0 : i32
    return %arg1, %arg0, %c0_i32 : i32, i32, i32
  }
  func.func @transform_1(%arg0: i32, %arg1: i32) -> (i32, i32) {
    %c0_i32 = arith.constant 0 : i32
    %c0_i32_0 = arith.constant 0 : i32
    %c0_i32_1 = arith.constant 0 : i32
    return %c0_i32, %c0_i32_0 : i32, i32
  }
  func.func @transform_2(%arg0: i32, %arg1: i32) -> (i32, i32) {
    %c0_i32 = arith.constant 0 : i32
    %c0_i32_0 = arith.constant 0 : i32
    %c0_i32_1 = arith.constant 0 : i32
    return %c0_i32, %c0_i32_0 : i32, i32
  }
  func.func @transform_3(%arg0: i32, %arg1: i32) -> (i32, i32) {
    %c0_i32 = arith.constant 0 : i32
    %c0_i32_0 = arith.constant 0 : i32
    return %arg0, %c0_i32 : i32, i32
  }
}

</mosaic_0001>

<bundles_post_ra>
// kernel: utterance_model_forward.1
= control target key start
LH: loop header
LB: loop body
LE: loop exit
PB: predicated region body
PF: predicated region fallthrough
CT: control target
= control target key end

     0   :  { %8 = vsyncpa [#allocation3], 0  ;;  %s2025_s0 = inlined_call_operand.vmem [shape: bf16[8,8,384], index: 0, kind: input, shape index: {}]   ;;  %s2026_s1 = inlined_call_operand.hbm [shape: bf16[128,384], index: 1, kind: input, shape index: {}]   ;;  %s2027_s2 = inlined_call_operand.hbm [shape: f32[1,128], index: 2, kind: input, shape index: {}]   ;;  %s2028_s3 = inlined_call_operand.vmem [shape: f32[8,128], index: 3, kind: output, shape index: {}]  }
   0x1   :  { %9 = vsyncpa [#allocation5], 0  ;;  %s1560_s12 = smov [#allocation2]   ;;  %s1512_s16 = scalar_lea.hbm %s2026_s1, 3072 }
   0x2   :  { %s17_s13 = sshll.u32 %s1560_s12, 4  ;;  %p1513_p0 = scmp.ne.s32.totalorder %s2026_s1, %s1512_s16  ;;  %s18_s13 = int_to_ptr.vmem [resolvable:$true] %s17_s13 }
   0x3   :  { %p1516_p1 = scmp.lt.u32.totalorder %s1512_s16, %s2026_s1 }
   0x5   :  { %p1518_p2 = pnand %p1516_p1, %p1513_p0 }
   0x7   :  { %1521 = shalt.err (!%p1518_p2)
}
   0x8   :  { %s1522_s21 = scalar_lea.vmem %s18_s13, 3072  ;;  %p1527_p4 = scmp.lt.s32.totalorder %s18_s13, %s18_s13 }
   0x9   :  { %p1523_p3 = scmp.ne.s32.totalorder %s18_s13, %s1522_s21  ;;  %p1528_p5 = scmp.lt.s32.totalorder %s1522_s21, %s1522_s21 }
   0xb   :  { %p1529_p6 = por %p1528_p5, %p1527_p4 }
   0xd   :  { %p1530_p7 = pnand %p1529_p6, %p1523_p3 }
   0xf   :  { %1533 = shalt.err (!%p1530_p7)
}
  0x10   :  { %s1561_s22 = smov 192   ;;  %s1562_s23 = smov 12  }
  0x11   :  { %23 = dma.hbm_to_vmem [thread:$0]  %s2026_s1, 3072, %s18_s13, [#allocation3], %s1561_s22, %s1561_s22, %s1562_s23  }
  0x12   :  { %s1563_s26 = smov [#allocation4]   ;;  %s1534_s30 = scalar_lea.hbm %s2027_s2, 16 }
  0x13   :  { %s30_s27 = sshll.u32 %s1563_s26, 4  ;;  %p1535_p8 = scmp.ne.s32.totalorder %s2027_s2, %s1534_s30  ;;  %s31_s27 = int_to_ptr.vmem [resolvable:$true] %s30_s27 }
  0x14   :  { %p1538_p9 = scmp.lt.u32.totalorder %s1534_s30, %s2027_s2 }
  0x16   :  { %p1540_p10 = pnand %p1538_p9, %p1535_p8 }
  0x18   :  { %1543 = shalt.err (!%p1540_p10)
}
  0x19   :  { %s1544_s8 = scalar_lea.vmem %s31_s27, 16  ;;  %s1548_s1 = scalar_lea.vmem %s31_s27, 32 }
  0x1a   :  { %p1545_p11 = scmp.ne.s32.totalorder %s31_s27, %s1544_s8  ;;  %p1549_p12 = scmp.lt.s32.totalorder %s31_s27, %s31_s27 }
  0x1b   :  { %p1550_p13 = scmp.lt.s32.totalorder %s1548_s1, %s1544_s8 }
  0x1d   :  { %p1551_p0 = por %p1550_p13, %p1549_p12 }
  0x1f   :  { %p1552_p1 = pnand %p1551_p0, %p1545_p11 }
  0x21   :  { %1555 = shalt.err (!%p1552_p1)
}
  0x22   :  { %33 = dma.hbm_to_vmem [thread:$0]  %s2027_s2, 16, %s31_s27, [#allocation5]  }
  0x23   :  { %1556 = dma.done.wait [#allocation3], 3072  }
  0x24   :  { %1557 = vsyncadd [#allocation3], 4294964224 }
  0x25   :  { %1558 = dma.done.wait [#allocation5], 16  }
  0x26   :  { %1559 = vsyncadd [#allocation5], 4294967280  ;;  %v1564_v0 = vmov 0.0   ;;  %v1565_v1 = vmov 0   ;;  %vm1566_vm0 = vmmov 0   ;;  %v1567_v25 = vmov 0.0|0.0  }
  0x27   :  { %1227 = vmatprep.subr.bf16.mxu1 %v1564_v0  ;;  %252 = vmatprep.mubr.bf16.mxu0 %v1565_v1  ;;  %v1616_v2 = vld [vmem:[#allocation2 + $0x4] ss:$12 sps:$4 sm:$0xff]   ;;  %v1618_v3 = vld [vmem:[#allocation2] ss:$12 sps:$4 sm:$0xff]   ;;  %v1621_v4 = vld [vmem:[#allocation2 + $0x1c] ss:$12 sps:$4 sm:$0xff]  }
  0x28   :  { %1243 = vmatprep.mubr.msk.bf16.mxu1 %vm1566_vm0, %v1564_v0  ;;  %220 = vmatprep.subr.bf16.mxu0 %v1616_v2  ;;  %v1624_v5 = vld [vmem:[#allocation2 + $0x18] ss:$12 sps:$4 sm:$0xff]   ;;  %v1627_v6 = vld [vmem:[#allocation2 + $0x34] ss:$12 sps:$4 sm:$0xff]   ;;  %v1630_v7 = vld [vmem:[#allocation2 + $0x30] ss:$12 sps:$4 sm:$0xff]  }
  0x29   :  { %221 = vmatpush1.bf16.msra.mxu0 %v1618_v3  ;;  %v1633_v8 = vld [vmem:[#allocation2 + $0x4c] ss:$12 sps:$4 sm:$0xff]   ;;  %v1635_v9 = vld [vmem:[#allocation2 + $0x8] ss:$12 sps:$4 sm:$0xff]   ;;  %v1642_v11 = vld [vmem:[#allocation2 + $0x64] ss:$12 sps:$4 sm:$0xff]  }
  0x2a   :  { %222 = vmatprep.subr.bf16.mxu0 %v1621_v4  ;;  %v1638_v10 = vld [vmem:[#allocation2 + $0x48] ss:$12 sps:$4 sm:$0xff]   ;;  %1228 = vmatpush3.bf16.msra.mxu1 %v1635_v9  ;;  %v1645_v12 = vld [vmem:[#allocation2 + $0x20] ss:$12 sps:$4 sm:$0xff]   ;;  %v1651_v14 = vld [vmem:[#allocation2 + $0x38] ss:$12 sps:$4 sm:$0xff]  }
  0x2b   :  { %1229 = vmatprep.subr.bf16.mxu1 %v1564_v0  ;;  %v1647_v13 = vld [vmem:[#allocation2 + $0x60] ss:$12 sps:$4 sm:$0xff]   ;;  %v1654_v15 = vld [vmem:[#allocation2 + $0x7c] ss:$12 sps:$4 sm:$0xff]   ;;  %v1658_v16 = vld [vmem:[#allocation2 + $0x78] ss:$12 sps:$4 sm:$0xff]  }
  0x2c   :  { %v1661_v17 = vld [vmem:[#allocation2 + $0x50] ss:$12 sps:$4 sm:$0xff]   ;;  %v1664_v18 = vld [vmem:[#allocation2 + $0x94] ss:$12 sps:$4 sm:$0xff]   ;;  %v1674_v21 = vld [vmem:[#allocation2 + $0xac] ss:$12 sps:$4 sm:$0xff]  }
  0x2d   :  { %223 = vmatpush1.bf16.msra.mxu0 %v1624_v5  ;;  %v1668_v19 = vld [vmem:[#allocation2 + $0x90] ss:$12 sps:$4 sm:$0xff]   ;;  %v1671_v20 = vld [vmem:[#allocation2 + $0x68] ss:$12 sps:$4 sm:$0xff]   ;;  %v1681_v23 = vld [vmem:[#allocation2 + $0x80] ss:$12 sps:$4 sm:$0xff]  }
  0x2e   :  { %224 = vmatprep.subr.bf16.mxu0 %v1627_v6  ;;  %1230 = vmatpush3.bf16.msra.mxu1 %v1645_v12  ;;  %v1678_v22 = vld [vmem:[#allocation2 + $0xa8] ss:$12 sps:$4 sm:$0xff]   ;;  %v1687_v24 = vld [vmem:[#allocation2 + $0x98] ss:$12 sps:$4 sm:$0xff]   ;;  %v1692_v26 = vld [vmem:[#allocation2 + $0xb0] ss:$12 sps:$4 sm:$0xff]  }
  0x2f   :  { %1231 = vmatprep.subr.bf16.mxu1 %v1564_v0  ;;  %v54_v27 = vld [vmem:[%s2025_s0] sm:$0xff]  ;;  %v1735_v45 = vld [vmem:[#allocation4] ss:$0 sm:$0xff]  ;;  %v1740_v46 = vld [vmem:[%s2025_s0 + $0x8] ss:$12 sps:$4 sm:$0xff]  }
  0x30   :  { %v56_v28 = vunpack.c.l.bf16 %v54_v27  ;;  %v57_v30 = vunpack.c.h.bf16 %v54_v27  ;;  %v58_v49 = vunpack.c.l.bf16 %v1740_v46  ;;  %v1127_v60 = vld [vmem:[%s2025_s0 + $0xc] sm:$0xff] }
  0x31   :  { %225 = vmatpush1.bf16.msra.mxu0 %v1630_v7  ;;  %v326_v61 = vunpack.c.l.bf16 %v1127_v60 }
  0x32   :  { %226 = vmatprep.subr.bf16.mxu0 %v1633_v8  ;;  %1232 = vmatpush3.bf16.msra.mxu1 %v1651_v14 }
  0x33   :  { %1233 = vmatprep.subr.bf16.mxu1 %v1564_v0 }
  0x35   :  { %227 = vmatpush1.bf16.msra.mxu0 %v1638_v10 }
  0x36   :  { %228 = vmatprep.subr.bf16.mxu0 %v1642_v11  ;;  %1234 = vmatpush3.bf16.msra.mxu1 %v1661_v17 }
  0x37   :  { %1235 = vmatprep.subr.bf16.mxu1 %v1564_v0 }
  0x39   :  { %229 = vmatpush1.bf16.msra.mxu0 %v1647_v13 }
  0x3a   :  { %230 = vmatprep.subr.bf16.mxu0 %v1654_v15  ;;  %1236 = vmatpush3.bf16.msra.mxu1 %v1671_v20 }
  0x3b   :  { %1237 = vmatprep.subr.bf16.mxu1 %v1564_v0 }
  0x3d   :  { %231 = vmatpush1.bf16.msra.mxu0 %v1658_v16 }
  0x3e   :  { %232 = vmatprep.subr.bf16.mxu0 %v1664_v18  ;;  %1238 = vmatpush3.bf16.msra.mxu1 %v1681_v23 }
  0x3f   :  { %1239 = vmatprep.subr.bf16.mxu1 %v1564_v0 }
  0x41   :  { %233 = vmatpush1.bf16.msra.mxu0 %v1668_v19 }
  0x42   :  { %234 = vmatprep.subr.bf16.mxu0 %v1674_v21  ;;  %1240 = vmatpush3.bf16.msra.mxu1 %v1687_v24 }
  0x43   :  { %1241 = vmatprep.subr.bf16.mxu1 %v1564_v0 }
  0x45   :  { %235 = vmatpush1.bf16.msra.mxu0 %v1678_v22 }
  0x46   :  { %330 = vmatprep.subr.bf16.mxu0 %v1616_v2  ;;  %1242 = vmatpush3.bf16.msra.mxu1 %v1692_v26 }
  0x47   :  { %1247 = vmatprep.subr.bf16.mxu1 %v1564_v0 }
  0x48   :  { %253 = vmatmul.mubr.bf16.vlgmr.msra.gmra.mrb[0].mxu0 %v1567_v25 }
  0x49   :  { %331 = vmatpush1.bf16.msra.mxu0 %v1618_v3  ;;  %362 = vmatprep.mubr.bf16.mxu0 %v1565_v1 }
  0x4a   :  { %332 = vmatprep.subr.bf16.mxu0 %v1621_v4  ;;  %1244 = vmatmul.mubr.bf16.vlgmr.msra.gmra.mrb[0].mxu1 %v1567_v25  ;;  %v327_v25 = vunpack.c.h.bf16 %v1127_v60 }
  0x4b   :  { %1248 = vmatpush3.bf16.msra.mxu1 %v1635_v9  ;;  %1263 = vmatprep.mubr.msk.bf16.mxu1 %vm1566_vm0, %v1564_v0 }
  0x4c   :  { %1249 = vmatprep.subr.bf16.mxu1 %v1564_v0 }
  0x4d   :  { %333 = vmatpush1.bf16.msra.mxu0 %v1624_v5 }
  0x4e   :  { %334 = vmatprep.subr.bf16.mxu0 %v1627_v6 }
  0x4f   :  { %1250 = vmatpush3.bf16.msra.mxu1 %v1645_v12 }
  0x50   :  { %1251 = vmatprep.subr.bf16.mxu1 %v1564_v0 }
  0x51   :  { %335 = vmatpush1.bf16.msra.mxu0 %v1630_v7 }
  0x52   :  { %336 = vmatprep.subr.bf16.mxu0 %v1633_v8 }
  0x53   :  { %1252 = vmatpush3.bf16.msra.mxu1 %v1651_v14 }
  0x54   :  { %1253 = vmatprep.subr.bf16.mxu1 %v1564_v0 }
  0x55   :  { %337 = vmatpush1.bf16.msra.mxu0 %v1638_v10 }
  0x56   :  { %338 = vmatprep.subr.bf16.mxu0 %v1642_v11 }
  0x57   :  { %1254 = vmatpush3.bf16.msra.mxu1 %v1661_v17 }
  0x58   :  { %1255 = vmatprep.subr.bf16.mxu1 %v1564_v0 }
  0x59   :  { %339 = vmatpush1.bf16.msra.mxu0 %v1647_v13 }
  0x5a   :  { %340 = vmatprep.subr.bf16.mxu0 %v1654_v15 }
  0x5b   :  { %1256 = vmatpush3.bf16.msra.mxu1 %v1671_v20 }
  0x5c   :  { %1257 = vmatprep.subr.bf16.mxu1 %v1564_v0 }
  0x5d   :  { %341 = vmatpush1.bf16.msra.mxu0 %v1658_v16 }
  0x5e   :  { %342 = vmatprep.subr.bf16.mxu0 %v1664_v18 }
  0x5f   :  { %1258 = vmatpush3.bf16.msra.mxu1 %v1681_v23 }
  0x60   :  { %1259 = vmatprep.subr.bf16.mxu1 %v1564_v0 }
  0x61   :  { %343 = vmatpush1.bf16.msra.mxu0 %v1668_v19 }
  0x62   :  { %344 = vmatprep.subr.bf16.mxu0 %v1674_v21 }
  0x63   :  { %1260 = vmatpush3.bf16.msra.mxu1 %v1687_v24 }
  0x64   :  { %1261 = vmatprep.subr.bf16.mxu1 %v1564_v0 }
  0x65   :  { %345 = vmatpush1.bf16.msra.mxu0 %v1678_v22 }
  0x66   :  { %440 = vmatprep.subr.bf16.mxu0 %v1616_v2 }
  0x67   :  { %1262 = vmatpush3.bf16.msra.mxu1 %v1692_v26 }
  0x68   :  { %1267 = vmatprep.subr.bf16.mxu1 %v1564_v0 }
 0x11b   :  { %v254_v29 = vpop.f32.mrb[0].mxu0 }
 0x11c   :  { %v301_v31 = vadd.f32 %v254_v29, %v56_v28  ;;  %v256_v32 = vpop.f32.mrb[1].mxu0 }
 0x11d   :  { %v258_v33 = vpop.f32.mrb[2].mxu0  ;;  %v308_v36 = vadd.f32 %v256_v32, %v57_v30  ;;  %v295_v38 = vpop.f32.mrb[0].mxu1 }
 0x11e   :  { %v1125_v34 = vmul.f32 -1.442695, %v301_v31  ;;  %v259_v35 = vpop.f32.mrb[3].mxu0  ;;  %v1245_v39 = vpop.f32.mrb[1].mxu1  ;;  %v315_v48 = vadd.f32 %v1735_v45, %v295_v38 }
 0x11f   :  { %v1126_v37 = vmul.f32 -1.442695, %v308_v36  ;;  %v298_v40 = vpop.f32.mrb[2].mxu1 }
 0x120   :  { %1426 = vpow2.f32 %v1125_v34  ;;  %v1246_v41 = vpop.f32.mrb[3].mxu1 }
 0x121   :  { %1428 = vpow2.f32 %v1126_v37  ;;  %v328_v41 = vunpack.c.h.bf16 %v1740_v46  ;;  %v1131_v46 = vld [vmem:[%s2025_s0 + $0x18] sm:$0xff] }
 0x12a   :  { %v1427_v42 = vpop.eup %1426 }
 0x12b   :  { %v305_v43 = vadd.f32 1.0, %v1427_v42  ;;  %v1429_v44 = vpop.eup %1428 }
 0x12c   :  { %v312_v47 = vadd.f32 1.0, %v1429_v44 }
 0x12d   :  { %1430 = vrcp.f32 %v305_v43 }
 0x12e   :  { %1432 = vrcp.f32 %v312_v47 }
 0x137   :  { %v1431_v50 = vpop.eup %1430 }
 0x138   :  { %v316_v51 = vmul.f32 %v1431_v50, %v315_v48  ;;  %v1433_v53 = vpop.eup %1432 }
 0x139   :  { %v319_v54 = vsub.f32 1.0, %v1433_v53  ;;  %v321_v57 = vmul.f32 0.0, %v1433_v53 }
 0x13a   :  { %v317_v52 = vadd.f32 %v316_v51, %v58_v49 }
 0x13c   :  { %1434 = vtanh.f32 %v317_v52 }
 0x146   :  { %v1435_v55 = vpop.eup %1434 }
 0x147   :  { %v320_v56 = vmul.f32 %v1435_v55, %v319_v54  ;;  %v436_v55 = vunpack.c.l.bf16 %v1131_v46 }
 0x149   :  { %v1744_v58 = vadd.f32 %v321_v57, %v320_v56 }
 0x14b   :  { %v329_v59 = vpack.c.bf16 %v1744_v58, %v1744_v58 }
 0x14d   :  { %363 = vmatmul.mubr.bf16.vlgmr.msra.gmra.mrb[4].mxu0 %v329_v59  ;;  %1264 = vmatmul.mubr.bf16.vlgmr.msra.gmra.mrb[4].mxu1 %v329_v59 }
 0x14e   :  { %441 = vmatpush1.bf16.msra.mxu0 %v1618_v3  ;;  %1268 = vmatpush3.bf16.msra.mxu1 %v1635_v9 }
 0x14f   :  { %442 = vmatprep.subr.bf16.mxu0 %v1621_v4  ;;  %1269 = vmatprep.subr.bf16.mxu1 %v1564_v0 }
 0x150   :  { %472 = vmatprep.mubr.bf16.mxu0 %v1565_v1  ;;  %1283 = vmatprep.mubr.msk.bf16.mxu1 %vm1566_vm0, %v1564_v0 }
 0x152   :  { %443 = vmatpush1.bf16.msra.mxu0 %v1624_v5  ;;  %1270 = vmatpush3.bf16.msra.mxu1 %v1645_v12 }
 0x153   :  { %444 = vmatprep.subr.bf16.mxu0 %v1627_v6  ;;  %1271 = vmatprep.subr.bf16.mxu1 %v1564_v0 }
 0x156   :  { %445 = vmatpush1.bf16.msra.mxu0 %v1630_v7  ;;  %1272 = vmatpush3.bf16.msra.mxu1 %v1651_v14 }
 0x157   :  { %446 = vmatprep.subr.bf16.mxu0 %v1633_v8  ;;  %1273 = vmatprep.subr.bf16.mxu1 %v1564_v0 }
 0x15a   :  { %447 = vmatpush1.bf16.msra.mxu0 %v1638_v10  ;;  %1274 = vmatpush3.bf16.msra.mxu1 %v1661_v17 }
 0x15b   :  { %448 = vmatprep.subr.bf16.mxu0 %v1642_v11  ;;  %1275 = vmatprep.subr.bf16.mxu1 %v1564_v0 }
 0x15e   :  { %449 = vmatpush1.bf16.msra.mxu0 %v1647_v13  ;;  %1276 = vmatpush3.bf16.msra.mxu1 %v1671_v20 }
 0x15f   :  { %450 = vmatprep.subr.bf16.mxu0 %v1654_v15  ;;  %1277 = vmatprep.subr.bf16.mxu1 %v1564_v0 }
 0x162   :  { %451 = vmatpush1.bf16.msra.mxu0 %v1658_v16  ;;  %1278 = vmatpush3.bf16.msra.mxu1 %v1681_v23 }
 0x163   :  { %452 = vmatprep.subr.bf16.mxu0 %v1664_v18  ;;  %1279 = vmatprep.subr.bf16.mxu1 %v1564_v0 }
 0x166   :  { %453 = vmatpush1.bf16.msra.mxu0 %v1668_v19  ;;  %1280 = vmatpush3.bf16.msra.mxu1 %v1687_v24 }
 0x167   :  { %454 = vmatprep.subr.bf16.mxu0 %v1674_v21  ;;  %1281 = vmatprep.subr.bf16.mxu1 %v1564_v0 }
 0x16a   :  { %455 = vmatpush1.bf16.msra.mxu0 %v1678_v22  ;;  %1282 = vmatpush3.bf16.msra.mxu1 %v1692_v26 }
 0x16b   :  { %550 = vmatprep.subr.bf16.mxu0 %v1616_v2  ;;  %1287 = vmatprep.subr.bf16.mxu1 %v1564_v0 }
 0x220   :  { %v364_v62 = vpop.f32.mrb[4].mxu0  ;;  %v405_v63 = vpop.f32.mrb[4].mxu1 }
 0x221   :  { %v411_v27 = vadd.f32 %v364_v62, %v326_v61  ;;  %v366_v28 = vpop.f32.mrb[5].mxu0  ;;  %v1265_v29 = vpop.f32.mrb[5].mxu1  ;;  %v425_v42 = vadd.f32 %v1735_v45, %v405_v63 }
 0x222   :  { %v368_v30 = vpop.f32.mrb[6].mxu0  ;;  %v408_v31 = vpop.f32.mrb[6].mxu1  ;;  %v418_v35 = vadd.f32 %v366_v28, %v327_v25 }
 0x223   :  { %v1129_v32 = vmul.f32 -1.442695, %v411_v27  ;;  %v369_v33 = vpop.f32.mrb[7].mxu0  ;;  %v1266_v34 = vpop.f32.mrb[7].mxu1 }
 0x224   :  { %v1130_v36 = vmul.f32 -1.442695, %v418_v35  ;;  %v1834_v34 = vld [vmem:[%s2025_s0 + $0x20] ss:$12 sps:$4 sm:$0xff]  }
 0x225   :  { %1436 = vpow2.f32 %v1129_v32 }
 0x226   :  { %1438 = vpow2.f32 %v1130_v36  ;;  %v438_v36 = vunpack.c.l.bf16 %v1834_v34 }
 0x22f   :  { %v1437_v37 = vpop.eup %1436 }
 0x230   :  { %v415_v38 = vadd.f32 1.0, %v1437_v37  ;;  %v1439_v39 = vpop.eup %1438 }
 0x231   :  { %v422_v40 = vadd.f32 1.0, %v1439_v39 }
 0x232   :  { %1440 = vrcp.f32 %v415_v38 }
 0x233   :  { %1442 = vrcp.f32 %v422_v40 }
 0x23c   :  { %v1441_v43 = vpop.eup %1440 }
 0x23d   :  { %v426_v44 = vmul.f32 %v1441_v43, %v425_v42  ;;  %v1443_v48 = vpop.eup %1442 }
 0x23e   :  { %v429_v49 = vsub.f32 1.0, %v1443_v48  ;;  %v431_v52 = vmul.f32 %v1443_v48, %v1744_v58  ;;  %v437_v58 = vunpack.c.h.bf16 %v1131_v46 }
 0x23f   :  { %v427_v47 = vadd.f32 %v426_v44, %v328_v41 }
 0x241   :  { %1444 = vtanh.f32 %v427_v47 }
 0x24b   :  { %v1445_v50 = vpop.eup %1444 }
 0x24c   :  { %v430_v51 = vmul.f32 %v1445_v50, %v429_v49  ;;  %v1135_v50 = vld [vmem:[%s2025_s0 + $0x24] sm:$0xff] }
 0x24e   :  { %v1789_v53 = vadd.f32 %v431_v52, %v430_v51  ;;  %v546_v51 = vunpack.c.l.bf16 %v1135_v50 }
 0x250   :  { %v439_v54 = vpack.c.bf16 %v1789_v53, %v1789_v53 }
 0x252   :  { %473 = vmatmul.mubr.bf16.vlgmr.msra.gmra.mrb[8].mxu0 %v439_v54  ;;  %1284 = vmatmul.mubr.bf16.vlgmr.msra.gmra.mrb[8].mxu1 %v439_v54  ;;  %v547_v54 = vunpack.c.h.bf16 %v1135_v50 }
 0x253   :  { %551 = vmatpush1.bf16.msra.mxu0 %v1618_v3  ;;  %1288 = vmatpush3.bf16.msra.mxu1 %v1635_v9 }
 0x254   :  { %552 = vmatprep.subr.bf16.mxu0 %v1621_v4  ;;  %1289 = vmatprep.subr.bf16.mxu1 %v1564_v0 }
 0x255   :  { %582 = vmatprep.mubr.bf16.mxu0 %v1565_v1  ;;  %1303 = vmatprep.mubr.msk.bf16.mxu1 %vm1566_vm0, %v1564_v0 }
 0x257   :  { %553 = vmatpush1.bf16.msra.mxu0 %v1624_v5  ;;  %1290 = vmatpush3.bf16.msra.mxu1 %v1645_v12 }
 0x258   :  { %554 = vmatprep.subr.bf16.mxu0 %v1627_v6  ;;  %1291 = vmatprep.subr.bf16.mxu1 %v1564_v0 }
 0x25b   :  { %555 = vmatpush1.bf16.msra.mxu0 %v1630_v7  ;;  %1292 = vmatpush3.bf16.msra.mxu1 %v1651_v14 }
 0x25c   :  { %556 = vmatprep.subr.bf16.mxu0 %v1633_v8  ;;  %1293 = vmatprep.subr.bf16.mxu1 %v1564_v0 }
 0x25f   :  { %557 = vmatpush1.bf16.msra.mxu0 %v1638_v10  ;;  %1294 = vmatpush3.bf16.msra.mxu1 %v1661_v17 }
 0x260   :  { %558 = vmatprep.subr.bf16.mxu0 %v1642_v11  ;;  %1295 = vmatprep.subr.bf16.mxu1 %v1564_v0 }
 0x263   :  { %559 = vmatpush1.bf16.msra.mxu0 %v1647_v13  ;;  %1296 = vmatpush3.bf16.msra.mxu1 %v1671_v20 }
 0x264   :  { %560 = vmatprep.subr.bf16.mxu0 %v1654_v15  ;;  %1297 = vmatprep.subr.bf16.mxu1 %v1564_v0 }
 0x267   :  { %561 = vmatpush1.bf16.msra.mxu0 %v1658_v16  ;;  %1298 = vmatpush3.bf16.msra.mxu1 %v1681_v23 }
 0x268   :  { %562 = vmatprep.subr.bf16.mxu0 %v1664_v18  ;;  %1299 = vmatprep.subr.bf16.mxu1 %v1564_v0 }
 0x26b   :  { %563 = vmatpush1.bf16.msra.mxu0 %v1668_v19  ;;  %1300 = vmatpush3.bf16.msra.mxu1 %v1687_v24 }
 0x26c   :  { %564 = vmatprep.subr.bf16.mxu0 %v1674_v21  ;;  %1301 = vmatprep.subr.bf16.mxu1 %v1564_v0 }
 0x26f   :  { %565 = vmatpush1.bf16.msra.mxu0 %v1678_v22  ;;  %1302 = vmatpush3.bf16.msra.mxu1 %v1692_v26 }
 0x270   :  { %660 = vmatprep.subr.bf16.mxu0 %v1616_v2  ;;  %1307 = vmatprep.subr.bf16.mxu1 %v1564_v0 }
 0x325   :  { %v474_v56 = vpop.f32.mrb[8].mxu0  ;;  %v515_v57 = vpop.f32.mrb[8].mxu1 }
 0x326   :  { %v521_v59 = vadd.f32 %v474_v56, %v436_v55  ;;  %v476_v60 = vpop.f32.mrb[9].mxu0  ;;  %v1285_v61 = vpop.f32.mrb[9].mxu1  ;;  %v535_v37 = vadd.f32 %v1735_v45, %v515_v57 }
 0x327   :  { %v478_v62 = vpop.f32.mrb[10].mxu0  ;;  %v518_v63 = vpop.f32.mrb[10].mxu1  ;;  %v528_v29 = vadd.f32 %v476_v60, %v437_v58 }
 0x328   :  { %v1133_v25 = vmul.f32 -1.442695, %v521_v59  ;;  %v479_v27 = vpop.f32.mrb[11].mxu0  ;;  %v1286_v28 = vpop.f32.mrb[11].mxu1 }
 0x329   :  { %v1134_v30 = vmul.f32 -1.442695, %v528_v29 }
 0x32a   :  { %1446 = vpow2.f32 %v1133_v25 }
 0x32b   :  { %1448 = vpow2.f32 %v1134_v30  ;;  %v548_v30 = vunpack.c.h.bf16 %v1834_v34  ;;  %v1139_v34 = vld [vmem:[%s2025_s0 + $0x30] sm:$0xff] }
 0x334   :  { %v1447_v31 = vpop.eup %1446 }
 0x335   :  { %v525_v32 = vadd.f32 1.0, %v1447_v31  ;;  %v1449_v33 = vpop.eup %1448 }
 0x336   :  { %v532_v35 = vadd.f32 1.0, %v1449_v33 }
 0x337   :  { %1450 = vrcp.f32 %v525_v32 }
 0x338   :  { %1452 = vrcp.f32 %v532_v35 }
 0x341   :  { %v1451_v38 = vpop.eup %1450 }
 0x342   :  { %v536_v39 = vmul.f32 %v1451_v38, %v535_v37  ;;  %v1453_v41 = vpop.eup %1452 }
 0x343   :  { %v539_v42 = vsub.f32 1.0, %v1453_v41  ;;  %v541_v47 = vmul.f32 %v1453_v41, %v1789_v53 }
 0x344   :  { %v537_v40 = vadd.f32 %v536_v39, %v438_v36 }
 0x346   :  { %1454 = vtanh.f32 %v537_v40 }
 0x350   :  { %v1455_v43 = vpop.eup %1454 }
 0x351   :  { %v540_v44 = vmul.f32 %v1455_v43, %v539_v42  ;;  %v656_v43 = vunpack.c.l.bf16 %v1139_v34 }
 0x353   :  { %v1839_v48 = vadd.f32 %v541_v47, %v540_v44 }
 0x355   :  { %v549_v49 = vpack.c.bf16 %v1839_v48, %v1839_v48 }
 0x357   :  { %583 = vmatmul.mubr.bf16.vlgmr.msra.gmra.mrb[12].mxu0 %v549_v49  ;;  %1304 = vmatmul.mubr.bf16.vlgmr.msra.gmra.mrb[12].mxu1 %v549_v49 }
 0x358   :  { %661 = vmatpush1.bf16.msra.mxu0 %v1618_v3  ;;  %1308 = vmatpush3.bf16.msra.mxu1 %v1635_v9 }
 0x359   :  { %662 = vmatprep.subr.bf16.mxu0 %v1621_v4  ;;  %1309 = vmatprep.subr.bf16.mxu1 %v1564_v0 }
 0x35a   :  { %692 = vmatprep.mubr.bf16.mxu0 %v1565_v1  ;;  %1323 = vmatprep.mubr.msk.bf16.mxu1 %vm1566_vm0, %v1564_v0 }
 0x35c   :  { %663 = vmatpush1.bf16.msra.mxu0 %v1624_v5  ;;  %1310 = vmatpush3.bf16.msra.mxu1 %v1645_v12 }
 0x35d   :  { %664 = vmatprep.subr.bf16.mxu0 %v1627_v6  ;;  %1311 = vmatprep.subr.bf16.mxu1 %v1564_v0 }
 0x360   :  { %665 = vmatpush1.bf16.msra.mxu0 %v1630_v7  ;;  %1312 = vmatpush3.bf16.msra.mxu1 %v1651_v14 }
 0x361   :  { %666 = vmatprep.subr.bf16.mxu0 %v1633_v8  ;;  %1313 = vmatprep.subr.bf16.mxu1 %v1564_v0 }
 0x364   :  { %667 = vmatpush1.bf16.msra.mxu0 %v1638_v10  ;;  %1314 = vmatpush3.bf16.msra.mxu1 %v1661_v17 }
 0x365   :  { %668 = vmatprep.subr.bf16.mxu0 %v1642_v11  ;;  %1315 = vmatprep.subr.bf16.mxu1 %v1564_v0 }
 0x368   :  { %669 = vmatpush1.bf16.msra.mxu0 %v1647_v13  ;;  %1316 = vmatpush3.bf16.msra.mxu1 %v1671_v20 }
 0x369   :  { %670 = vmatprep.subr.bf16.mxu0 %v1654_v15  ;;  %1317 = vmatprep.subr.bf16.mxu1 %v1564_v0 }
 0x36c   :  { %671 = vmatpush1.bf16.msra.mxu0 %v1658_v16  ;;  %1318 = vmatpush3.bf16.msra.mxu1 %v1681_v23 }
 0x36d   :  { %672 = vmatprep.subr.bf16.mxu0 %v1664_v18  ;;  %1319 = vmatprep.subr.bf16.mxu1 %v1564_v0 }
 0x370   :  { %673 = vmatpush1.bf16.msra.mxu0 %v1668_v19  ;;  %1320 = vmatpush3.bf16.msra.mxu1 %v1687_v24 }
 0x371   :  { %674 = vmatprep.subr.bf16.mxu0 %v1674_v21  ;;  %1321 = vmatprep.subr.bf16.mxu1 %v1564_v0 }
 0x374   :  { %675 = vmatpush1.bf16.msra.mxu0 %v1678_v22  ;;  %1322 = vmatpush3.bf16.msra.mxu1 %v1692_v26 }
 0x375   :  { %770 = vmatprep.subr.bf16.mxu0 %v1616_v2  ;;  %1327 = vmatprep.subr.bf16.mxu1 %v1564_v0 }
 0x42a   :  { %v584_v52 = vpop.f32.mrb[12].mxu0  ;;  %v625_v53 = vpop.f32.mrb[12].mxu1 }
 0x42b   :  { %v631_v46 = vadd.f32 %v584_v52, %v546_v51  ;;  %v586_v55 = vpop.f32.mrb[13].mxu0  ;;  %v1305_v56 = vpop.f32.mrb[13].mxu1  ;;  %v645_v31 = vadd.f32 %v1735_v45, %v625_v53 }
 0x42c   :  { %v588_v57 = vpop.f32.mrb[14].mxu0  ;;  %v628_v58 = vpop.f32.mrb[14].mxu1  ;;  %v638_v62 = vadd.f32 %v586_v55, %v547_v54 }
 0x42d   :  { %v1137_v59 = vmul.f32 -1.442695, %v631_v46  ;;  %v589_v60 = vpop.f32.mrb[15].mxu0  ;;  %v1306_v61 = vpop.f32.mrb[15].mxu1 }
 0x42e   :  { %v1138_v63 = vmul.f32 -1.442695, %v638_v62  ;;  %v1929_v61 = vld [vmem:[%s2025_s0 + $0x38] ss:$12 sps:$4 sm:$0xff]  }
 0x42f   :  { %1456 = vpow2.f32 %v1137_v59 }
 0x430   :  { %1458 = vpow2.f32 %v1138_v63  ;;  %v658_v63 = vunpack.c.l.bf16 %v1929_v61 }
 0x439   :  { %v1457_v25 = vpop.eup %1456 }
 0x43a   :  { %v635_v27 = vadd.f32 1.0, %v1457_v25  ;;  %v1459_v28 = vpop.eup %1458 }
 0x43b   :  { %v642_v29 = vadd.f32 1.0, %v1459_v28 }
 0x43c   :  { %1460 = vrcp.f32 %v635_v27 }
 0x43d   :  { %1462 = vrcp.f32 %v642_v29 }
 0x446   :  { %v1461_v32 = vpop.eup %1460 }
 0x447   :  { %v646_v33 = vmul.f32 %v1461_v32, %v645_v31  ;;  %v1463_v36 = vpop.eup %1462 }
 0x448   :  { %v649_v37 = vsub.f32 1.0, %v1463_v36  ;;  %v651_v40 = vmul.f32 %v1463_v36, %v1839_v48  ;;  %v657_v48 = vunpack.c.h.bf16 %v1139_v34 }
 0x449   :  { %v647_v35 = vadd.f32 %v646_v33, %v548_v30 }
 0x44b   :  { %1464 = vtanh.f32 %v647_v35 }
 0x455   :  { %v1465_v38 = vpop.eup %1464 }
 0x456   :  { %v650_v39 = vmul.f32 %v1465_v38, %v649_v37 }
 0x458   :  { %v1884_v41 = vadd.f32 %v651_v40, %v650_v39 }
 0x45a   :  { %v659_v42 = vpack.c.bf16 %v1884_v41, %v1884_v41 }
 0x45c   :  { %693 = vmatmul.mubr.bf16.vlgmr.msra.gmra.mrb[16].mxu0 %v659_v42  ;;  %1324 = vmatmul.mubr.bf16.vlgmr.msra.gmra.mrb[16].mxu1 %v659_v42 }
 0x45d   :  { %771 = vmatpush1.bf16.msra.mxu0 %v1618_v3  ;;  %1328 = vmatpush3.bf16.msra.mxu1 %v1635_v9 }
 0x45e   :  { %772 = vmatprep.subr.bf16.mxu0 %v1621_v4  ;;  %1329 = vmatprep.subr.bf16.mxu1 %v1564_v0 }
 0x45f   :  { %802 = vmatprep.mubr.bf16.mxu0 %v1565_v1  ;;  %1343 = vmatprep.mubr.msk.bf16.mxu1 %vm1566_vm0, %v1564_v0 }
 0x461   :  { %773 = vmatpush1.bf16.msra.mxu0 %v1624_v5  ;;  %1330 = vmatpush3.bf16.msra.mxu1 %v1645_v12 }
 0x462   :  { %774 = vmatprep.subr.bf16.mxu0 %v1627_v6  ;;  %1331 = vmatprep.subr.bf16.mxu1 %v1564_v0 }
 0x465   :  { %775 = vmatpush1.bf16.msra.mxu0 %v1630_v7  ;;  %1332 = vmatpush3.bf16.msra.mxu1 %v1651_v14 }
 0x466   :  { %776 = vmatprep.subr.bf16.mxu0 %v1633_v8  ;;  %1333 = vmatprep.subr.bf16.mxu1 %v1564_v0 }
 0x469   :  { %777 = vmatpush1.bf16.msra.mxu0 %v1638_v10  ;;  %1334 = vmatpush3.bf16.msra.mxu1 %v1661_v17 }
 0x46a   :  { %778 = vmatprep.subr.bf16.mxu0 %v1642_v11  ;;  %1335 = vmatprep.subr.bf16.mxu1 %v1564_v0 }
 0x46d   :  { %779 = vmatpush1.bf16.msra.mxu0 %v1647_v13  ;;  %1336 = vmatpush3.bf16.msra.mxu1 %v1671_v20 }
 0x46e   :  { %780 = vmatprep.subr.bf16.mxu0 %v1654_v15  ;;  %1337 = vmatprep.subr.bf16.mxu1 %v1564_v0 }
 0x471   :  { %781 = vmatpush1.bf16.msra.mxu0 %v1658_v16  ;;  %1338 = vmatpush3.bf16.msra.mxu1 %v1681_v23 }
 0x472   :  { %782 = vmatprep.subr.bf16.mxu0 %v1664_v18  ;;  %1339 = vmatprep.subr.bf16.mxu1 %v1564_v0 }
 0x475   :  { %783 = vmatpush1.bf16.msra.mxu0 %v1668_v19  ;;  %1340 = vmatpush3.bf16.msra.mxu1 %v1687_v24 }
 0x476   :  { %784 = vmatprep.subr.bf16.mxu0 %v1674_v21  ;;  %1341 = vmatprep.subr.bf16.mxu1 %v1564_v0 }
 0x479   :  { %785 = vmatpush1.bf16.msra.mxu0 %v1678_v22  ;;  %1342 = vmatpush3.bf16.msra.mxu1 %v1692_v26 }
 0x47a   :  { %880 = vmatprep.subr.bf16.mxu0 %v1616_v2  ;;  %1347 = vmatprep.subr.bf16.mxu1 %v1564_v0 }
 0x52f   :  { %v694_v44 = vpop.f32.mrb[16].mxu0  ;;  %v735_v47 = vpop.f32.mrb[16].mxu1 }
 0x530   :  { %v741_v49 = vadd.f32 %v694_v44, %v656_v43  ;;  %v696_v50 = vpop.f32.mrb[17].mxu0  ;;  %v1325_v51 = vpop.f32.mrb[17].mxu1  ;;  %v755_v25 = vadd.f32 %v1735_v45, %v735_v47 }
 0x531   :  { %v698_v52 = vpop.f32.mrb[18].mxu0  ;;  %v738_v53 = vpop.f32.mrb[18].mxu1  ;;  %v748_v56 = vadd.f32 %v696_v50, %v657_v48  ;;  %v768_v51 = vunpack.c.h.bf16 %v1929_v61  ;;  %v1506_v61 = vld [vmem:[#allocation2] ss:$12 sps:$4 sm:$0xff]  }
 0x532   :  { %v1141_v54 = vmul.f32 -1.442695, %v741_v49  ;;  %v699_v46 = vpop.f32.mrb[19].mxu0  ;;  %v1326_v55 = vpop.f32.mrb[19].mxu1 }
 0x533   :  { %v1142_v57 = vmul.f32 -1.442695, %v748_v56 }
 0x534   :  { %1466 = vpow2.f32 %v1141_v54 }
 0x535   :  { %1468 = vpow2.f32 %v1142_v57 }
 0x53e   :  { %v1467_v58 = vpop.eup %1466 }
 0x53f   :  { %v745_v59 = vadd.f32 1.0, %v1467_v58  ;;  %v1469_v60 = vpop.eup %1468 }
 0x540   :  { %v752_v62 = vadd.f32 1.0, %v1469_v60 }
 0x541   :  { %1470 = vrcp.f32 %v745_v59 }
 0x542   :  { %1472 = vrcp.f32 %v752_v62 }
 0x54b   :  { %v1471_v27 = vpop.eup %1470 }
 0x54c   :  { %v756_v28 = vmul.f32 %v1471_v27, %v755_v25  ;;  %v1473_v30 = vpop.eup %1472  ;;  %v1508_v25 = vld [vmem:[#allocation2 + $0x18] ss:$12 sps:$4 sm:$0xff]   ;;  %v1509_v27 = vld [vmem:[#allocation2 + $0x34] ss:$12 sps:$4 sm:$0xff]  }
 0x54d   :  { %v759_v31 = vsub.f32 1.0, %v1473_v30  ;;  %v761_v35 = vmul.f32 %v1473_v30, %v1884_v41 }
 0x54e   :  { %v757_v29 = vadd.f32 %v756_v28, %v658_v63  ;;  %v1507_v63 = vld [vmem:[#allocation2 + $0x1c] ss:$12 sps:$4 sm:$0xff]  }
 0x54f   :  { %v1510_v28 = vld [vmem:[#allocation2 + $0x30] ss:$12 sps:$4 sm:$0xff]  }
 0x550   :  { %1474 = vtanh.f32 %v757_v29  ;;  %v1148_v29 = vld [vmem:[%s2025_s0 + $0x50] ss:$12 sps:$4 sm:$0xff]  }
 0x55a   :  { %v1475_v32 = vpop.eup %1474 }
 0x55b   :  { %v760_v33 = vmul.f32 %v1475_v32, %v759_v31  ;;  %v878_v31 = vunpack.c.l.bf16 %v1148_v29 }
 0x55d   :  { %v1934_v36 = vadd.f32 %v761_v35, %v760_v33 }
 0x55f   :  { %v769_v37 = vpack.c.bf16 %v1934_v36, %v1934_v36 }
 0x561   :  { %803 = vmatmul.mubr.bf16.vlgmr.msra.gmra.mrb[20].mxu0 %v769_v37  ;;  %1344 = vmatmul.mubr.bf16.vlgmr.msra.gmra.mrb[20].mxu1 %v769_v37 }
 0x562   :  { %881 = vmatpush1.bf16.msra.mxu0 %v1618_v3  ;;  %1348 = vmatpush3.bf16.msra.mxu1 %v1635_v9  ;;  %v1143_v3 = vld [vmem:[%s2025_s0 + $0x3c] sm:$0xff] }
 0x563   :  { %882 = vmatprep.subr.bf16.mxu0 %v1621_v4  ;;  %1349 = vmatprep.subr.bf16.mxu1 %v1564_v0  ;;  %v766_v4 = vunpack.c.l.bf16 %v1143_v3 }
 0x564   :  { %912 = vmatprep.mubr.bf16.mxu0 %v1565_v1  ;;  %1363 = vmatprep.mubr.msk.bf16.mxu1 %vm1566_vm0, %v1564_v0 }
 0x566   :  { %883 = vmatpush1.bf16.msra.mxu0 %v1624_v5  ;;  %1350 = vmatpush3.bf16.msra.mxu1 %v1645_v12 }
 0x567   :  { %884 = vmatprep.subr.bf16.mxu0 %v1627_v6  ;;  %1351 = vmatprep.subr.bf16.mxu1 %v1564_v0 }
 0x56a   :  { %885 = vmatpush1.bf16.msra.mxu0 %v1630_v7  ;;  %1352 = vmatpush3.bf16.msra.mxu1 %v1651_v14  ;;  %v767_v7 = vunpack.c.h.bf16 %v1143_v3 }
 0x56b   :  { %886 = vmatprep.subr.bf16.mxu0 %v1633_v8  ;;  %1353 = vmatprep.subr.bf16.mxu1 %v1564_v0 }
 0x56e   :  { %887 = vmatpush1.bf16.msra.mxu0 %v1638_v10  ;;  %1354 = vmatpush3.bf16.msra.mxu1 %v1661_v17 }
 0x56f   :  { %888 = vmatprep.subr.bf16.mxu0 %v1642_v11  ;;  %1355 = vmatprep.subr.bf16.mxu1 %v1564_v0 }
 0x572   :  { %889 = vmatpush1.bf16.msra.mxu0 %v1647_v13  ;;  %1356 = vmatpush3.bf16.msra.mxu1 %v1671_v20 }
 0x573   :  { %890 = vmatprep.subr.bf16.mxu0 %v1654_v15  ;;  %1357 = vmatprep.subr.bf16.mxu1 %v1564_v0 }
 0x576   :  { %891 = vmatpush1.bf16.msra.mxu0 %v1658_v16  ;;  %1358 = vmatpush3.bf16.msra.mxu1 %v1681_v23 }
 0x577   :  { %892 = vmatprep.subr.bf16.mxu0 %v1664_v18  ;;  %1359 = vmatprep.subr.bf16.mxu1 %v1564_v0 }
 0x57a   :  { %893 = vmatpush1.bf16.msra.mxu0 %v1668_v19  ;;  %1360 = vmatpush3.bf16.msra.mxu1 %v1687_v24 }
 0x57b   :  { %894 = vmatprep.subr.bf16.mxu0 %v1674_v21  ;;  %1361 = vmatprep.subr.bf16.mxu1 %v1564_v0 }
 0x57e   :  { %895 = vmatpush1.bf16.msra.mxu0 %v1678_v22  ;;  %1362 = vmatpush3.bf16.msra.mxu1 %v1692_v26 }
 0x57f   :  { %990 = vmatprep.subr.bf16.mxu0 %v1616_v2  ;;  %1367 = vmatprep.subr.bf16.mxu1 %v1564_v0 }
 0x634   :  { %v804_v5 = vpop.f32.mrb[20].mxu0  ;;  %v845_v6 = vpop.f32.mrb[20].mxu1 }
 0x635   :  { %v851_v8 = vadd.f32 %v804_v5, %v766_v4  ;;  %v806_v38 = vpop.f32.mrb[21].mxu0  ;;  %v1345_v39 = vpop.f32.mrb[21].mxu1  ;;  %v865_v52 = vadd.f32 %v1735_v45, %v845_v6 }
 0x636   :  { %v808_v40 = vpop.f32.mrb[22].mxu0  ;;  %v848_v41 = vpop.f32.mrb[22].mxu1  ;;  %v858_v44 = vadd.f32 %v806_v38, %v767_v7  ;;  %v1151_v38 = vld [vmem:[%s2025_s0 + $0x54] sm:$0xff] }
 0x637   :  { %v1145_v42 = vmul.f32 -1.442695, %v851_v8  ;;  %v809_v34 = vpop.f32.mrb[23].mxu0  ;;  %v1346_v43 = vpop.f32.mrb[23].mxu1  ;;  %v986_v39 = vunpack.c.l.bf16 %v1151_v38 }
 0x638   :  { %v1146_v2 = vmul.f32 -1.442695, %v858_v44 }
 0x639   :  { %1476 = vpow2.f32 %v1145_v42  ;;  %v987_v42 = vunpack.c.h.bf16 %v1151_v38 }
 0x63a   :  { %1478 = vpow2.f32 %v1146_v2 }
 0x643   :  { %v1477_v47 = vpop.eup %1476 }
 0x644   :  { %v855_v48 = vadd.f32 1.0, %v1477_v47  ;;  %v1479_v49 = vpop.eup %1478 }
 0x645   :  { %v862_v50 = vadd.f32 1.0, %v1479_v49 }
 0x646   :  { %1480 = vrcp.f32 %v855_v48 }
 0x647   :  { %1482 = vrcp.f32 %v862_v50 }
 0x650   :  { %v1481_v53 = vpop.eup %1480 }
 0x651   :  { %v866_v54 = vmul.f32 %v1481_v53, %v865_v52  ;;  %v1483_v55 = vpop.eup %1482 }
 0x652   :  { %v869_v56 = vsub.f32 1.0, %v1483_v55  ;;  %v871_v59 = vmul.f32 %v1483_v55, %v1934_v36 }
 0x653   :  { %v867_v46 = vadd.f32 %v866_v54, %v768_v51 }
 0x655   :  { %1484 = vtanh.f32 %v867_v46 }
 0x65f   :  { %v1485_v57 = vpop.eup %1484 }
 0x660   :  { %v870_v58 = vmul.f32 %v1485_v57, %v869_v56  ;;  %v988_v56 = vunpack.c.h.bf16 %v1148_v29 }
 0x662   :  { %v1979_v60 = vadd.f32 %v871_v59, %v870_v58 }
 0x664   :  { %v879_v62 = vpack.c.bf16 %v1979_v60, %v1979_v60 }
 0x666   :  { %913 = vmatmul.mubr.bf16.vlgmr.msra.gmra.mrb[24].mxu0 %v879_v62  ;;  %1364 = vmatmul.mubr.bf16.vlgmr.msra.gmra.mrb[24].mxu1 %v879_v62 }
 0x667   :  { %991 = vmatpush1.bf16.msra.mxu0 %v1506_v61  ;;  %1368 = vmatpush3.bf16.msra.mxu1 %v1635_v9  ;;  %v1511_v9 = vld [vmem:[#allocation2 + $0x4c] ss:$12 sps:$4 sm:$0xff]  }
 0x668   :  { %992 = vmatprep.subr.bf16.mxu0 %v1507_v63  ;;  %1369 = vmatprep.subr.bf16.mxu1 %v1564_v0 }
 0x669   :  { %1022 = vmatprep.mubr.bf16.mxu0 %v1565_v1  ;;  %1383 = vmatprep.mubr.msk.bf16.mxu1 %vm1566_vm0, %v1564_v0  ;;  %v1147_v1 = vld [vmem:[%s2025_s0 + $0x48] sm:$0xff] }
 0x66b   :  { %993 = vmatpush1.bf16.msra.mxu0 %v1508_v25  ;;  %1370 = vmatpush3.bf16.msra.mxu1 %v1645_v12 }
 0x66c   :  { %994 = vmatprep.subr.bf16.mxu0 %v1509_v27  ;;  %1371 = vmatprep.subr.bf16.mxu1 %v1564_v0 }
 0x66f   :  { %995 = vmatpush1.bf16.msra.mxu0 %v1510_v28  ;;  %1372 = vmatpush3.bf16.msra.mxu1 %v1651_v14 }
 0x670   :  { %996 = vmatprep.subr.bf16.mxu0 %v1511_v9  ;;  %1373 = vmatprep.subr.bf16.mxu1 %v1564_v0 }
 0x673   :  { %997 = vmatpush1.bf16.msra.mxu0 %v1638_v10  ;;  %1374 = vmatpush3.bf16.msra.mxu1 %v1661_v17  ;;  %v876_v10 = vunpack.c.l.bf16 %v1147_v1 }
 0x674   :  { %998 = vmatprep.subr.bf16.mxu0 %v1642_v11  ;;  %1375 = vmatprep.subr.bf16.mxu1 %v1564_v0 }
 0x677   :  { %999 = vmatpush1.bf16.msra.mxu0 %v1647_v13  ;;  %1376 = vmatpush3.bf16.msra.mxu1 %v1671_v20  ;;  %v877_v13 = vunpack.c.h.bf16 %v1147_v1 }
 0x678   :  { %1000 = vmatprep.subr.bf16.mxu0 %v1654_v15  ;;  %1377 = vmatprep.subr.bf16.mxu1 %v1564_v0 }
 0x67b   :  { %1001 = vmatpush1.bf16.msra.mxu0 %v1658_v16  ;;  %1378 = vmatpush3.bf16.msra.mxu1 %v1681_v23 }
 0x67c   :  { %1002 = vmatprep.subr.bf16.mxu0 %v1664_v18  ;;  %1379 = vmatprep.subr.bf16.mxu1 %v1564_v0 }
 0x67f   :  { %1003 = vmatpush1.bf16.msra.mxu0 %v1668_v19  ;;  %1380 = vmatpush3.bf16.msra.mxu1 %v1687_v24 }
 0x680   :  { %1004 = vmatprep.subr.bf16.mxu0 %v1674_v21  ;;  %1381 = vmatprep.subr.bf16.mxu1 %v1564_v0 }
 0x683   :  { %1005 = vmatpush1.bf16.msra.mxu0 %v1678_v22  ;;  %1382 = vmatpush3.bf16.msra.mxu1 %v1692_v26 }
 0x739   :  { %v914_v11 = vpop.f32.mrb[24].mxu0  ;;  %v955_v12 = vpop.f32.mrb[24].mxu1 }
 0x73a   :  { %v961_v14 = vadd.f32 %v914_v11, %v876_v10  ;;  %v916_v15 = vpop.f32.mrb[25].mxu0  ;;  %v1365_v16 = vpop.f32.mrb[25].mxu1  ;;  %v975_v32 = vadd.f32 %v1735_v45, %v955_v12 }
 0x73b   :  { %v918_v17 = vpop.f32.mrb[26].mxu0  ;;  %v958_v18 = vpop.f32.mrb[26].mxu1  ;;  %v968_v21 = vadd.f32 %v916_v15, %v877_v13 }
 0x73c   :  { %v1149_v19 = vmul.f32 -1.442695, %v961_v14  ;;  %v919_v20 = vpop.f32.mrb[27].mxu0  ;;  %v1366_v0 = vpop.f32.mrb[27].mxu1 }
 0x73d   :  { %v1150_v22 = vmul.f32 -1.442695, %v968_v21 }
 0x73e   :  { %1486 = vpow2.f32 %v1149_v19 }
 0x73f   :  { %1488 = vpow2.f32 %v1150_v22 }
 0x748   :  { %v1487_v23 = vpop.eup %1486 }
 0x749   :  { %v965_v24 = vadd.f32 1.0, %v1487_v23  ;;  %v1489_v26 = vpop.eup %1488 }
 0x74a   :  { %v972_v30 = vadd.f32 1.0, %v1489_v26 }
 0x74b   :  { %1490 = vrcp.f32 %v965_v24 }
 0x74c   :  { %1492 = vrcp.f32 %v972_v30 }
 0x755   :  { %v1491_v33 = vpop.eup %1490 }
 0x756   :  { %v976_v35 = vmul.f32 %v1491_v33, %v975_v32  ;;  %v1493_v37 = vpop.eup %1492 }
 0x757   :  { %v979_v3 = vsub.f32 1.0, %v1493_v37  ;;  %v981_v6 = vmul.f32 %v1493_v37, %v1979_v60 }
 0x758   :  { %v977_v36 = vadd.f32 %v976_v35, %v878_v31 }
 0x75a   :  { %1494 = vtanh.f32 %v977_v36 }
 0x764   :  { %v1495_v4 = vpop.eup %1494 }
 0x765   :  { %v980_v5 = vmul.f32 %v1495_v4, %v979_v3 }
 0x767   :  { %v982_v7 = vadd.f32 %v981_v6, %v980_v5 }
 0x769   :  { %v989_v8 = vpack.c.bf16 %v982_v7, %v982_v7 }
 0x76b   :  { %1023 = vmatmul.mubr.bf16.vlgmr.msra.gmra.mrb[28].mxu0 %v989_v8  ;;  %1384 = vmatmul.mubr.bf16.vlgmr.msra.gmra.mrb[28].mxu1 %v989_v8 }
 0x83e   :  { %v1024_v40 = vpop.f32.mrb[28].mxu0  ;;  %v1065_v41 = vpop.f32.mrb[28].mxu1 }
 0x83f   :  { %v1071_v34 = vadd.f32 %v1024_v40, %v986_v39  ;;  %v1026_v43 = vpop.f32.mrb[29].mxu0  ;;  %v1385_v44 = vpop.f32.mrb[29].mxu1  ;;  %v1085_v57 = vadd.f32 %v1735_v45, %v1065_v41 }
 0x840   :  { %v1028_v2 = vpop.f32.mrb[30].mxu0  ;;  %v1068_v47 = vpop.f32.mrb[30].mxu1  ;;  %v1078_v51 = vadd.f32 %v1026_v43, %v987_v42 }
 0x841   :  { %v1153_v48 = vmul.f32 -1.442695, %v1071_v34  ;;  %v1029_v49 = vpop.f32.mrb[31].mxu0  ;;  %v1386_v50 = vpop.f32.mrb[31].mxu1 }
 0x842   :  { %v1154_v52 = vmul.f32 -1.442695, %v1078_v51 }
 0x843   :  { %1496 = vpow2.f32 %v1153_v48 }
 0x844   :  { %1498 = vpow2.f32 %v1154_v52 }
 0x84d   :  { %v1497_v53 = vpop.eup %1496 }
 0x84e   :  { %v1075_v54 = vadd.f32 1.0, %v1497_v53  ;;  %v1499_v46 = vpop.eup %1498 }
 0x84f   :  { %v1082_v55 = vadd.f32 1.0, %v1499_v46 }
 0x850   :  { %1500 = vrcp.f32 %v1075_v54 }
 0x851   :  { %1502 = vrcp.f32 %v1082_v55 }
 0x85a   :  { %v1501_v58 = vpop.eup %1500 }
 0x85b   :  { %v1086_v59 = vmul.f32 %v1501_v58, %v1085_v57  ;;  %v1503_v62 = vpop.eup %1502 }
 0x85c   :  { %v1089_v61 = vsub.f32 1.0, %v1503_v62  ;;  %v1091_v27 = vmul.f32 %v1503_v62, %v982_v7 }
 0x85d   :  { %v1087_v60 = vadd.f32 %v1086_v59, %v988_v56 }
 0x85f   :  { %1504 = vtanh.f32 %v1087_v60 }
 0x869   :  { %v1505_v63 = vpop.eup %1504 }
 0x86a   :  { %v1090_v25 = vmul.f32 %v1505_v63, %v1089_v61 }
 0x86c   :  { %v1092_v28 = vadd.f32 %v1091_v27, %v1090_v25 }
 0x86e   :  { %1093 = vst [vmem:[%s2028_s3] sm:$0xff] %v1092_v28 }
 0x86f   :  { %1098 = vsyncpa [#allocation3], 1 }
 0x870   :  { %1099 = vsyncpa [#allocation5], 1 }

</bundles_post_ra>
